<compile_context>
chip_gen: v7x
topology: tpu7x:2x2x1
jax: 0.10.0
libtpu: 0.0.40
codegen_flags: <defaults>
</compile_context>

<pallas_src>
import math
from functools import partial

import jax
import jax.numpy as jnp
from jax.experimental import pallas as pl
from jax.experimental.pallas import tpu as pltpu


# ----------------------------- Pallas kernel -----------------------------
def _sdpa_kernel(q_ref, k_ref, v_ref, mask_ref, ctx_ref, prob_ref, *, scale, n_head):
    # One batch element per grid step; all heads processed together.
    q = (q_ref[0] * scale).astype(jnp.bfloat16)   # (H, Sq, dh), scale folded into Q
    k = k_ref[0].astype(jnp.bfloat16)             # (H, Sk, dh)
    v = v_ref[0].astype(jnp.bfloat16)             # (H, Sk, dh)

    # masked_fill(mask, -1e9) as an additive bias built in-kernel from the
    # int8 0/1 mask (one cast + one VPU mul on a (Sq, Sk) tile).
    bias = mask_ref[0].astype(jnp.float32) * jnp.float32(-1e9)   # (Sq, Sk)

    # Scores: batched over heads, bf16 in / f32 accumulate on the MXU.
    s = jnp.einsum("hqd,hkd->hqk", q, k, preferred_element_type=jnp.float32)
    s = s + bias[None, :, :]

    # Numerically-stable softmax; the divide goes to the EUP via approx recip.
    m = jnp.max(s, axis=-1, keepdims=True)
    e = jnp.exp(s - m)
    denom = jnp.sum(e, axis=-1, keepdims=True)
    p = e * pl.reciprocal(denom, approx=True)     # (H, Sq, Sk) f32
    prob_ref[0] = p

    # Context: batched P @ V, heads concatenated on the lane axis so the store
    # is a single lane-dense (Sq, H*dh) tile.
    ctx = jnp.einsum("hqk,hkd->hqd", p.astype(jnp.bfloat16), v,
                     preferred_element_type=jnp.float32)
    ctx_ref[0] = jnp.concatenate([ctx[h] for h in range(n_head)], axis=-1)


# ----------------------------- wrapper -----------------------------
def scaled_dot_product_attention(q, k, v, attn_mask):
    """ScaledDotProductAttention forward.

    q, k, v   : (B, H, S, d_head) float32
    attn_mask : (B, Sq, Sk); nonzero/True = masked (shared across heads)
    returns   : context (B, H, Sq, d_head) f32, attn_prob (B, H, Sq, Sk) f32
    """
    B, H, Sq, dh = q.shape
    Sk = k.shape[2]
    scale = 1.0 / math.sqrt(dh)

    # Normalize the mask to a compact int8 0/1 tensor (1 byte/elem DMA into
    # the kernel; the -1e9 bias is built inside the kernel).
    mask_i8 = attn_mask.astype(bool).astype(jnp.int8)

    ctx_flat, prob = pl.pallas_call(
        partial(_sdpa_kernel, scale=scale, n_head=H),
        out_shape=(
            jax.ShapeDtypeStruct((B, Sq, H * dh), jnp.float32),
            jax.ShapeDtypeStruct((B, H, Sq, Sk), jnp.float32),
        ),
        grid=(B,),
        in_specs=[
            pl.BlockSpec((1, H, Sq, dh), lambda b: (b, 0, 0, 0)),
            pl.BlockSpec((1, H, Sk, dh), lambda b: (b, 0, 0, 0)),
            pl.BlockSpec((1, H, Sk, dh), lambda b: (b, 0, 0, 0)),
            pl.BlockSpec((1, Sq, Sk), lambda b: (b, 0, 0)),
        ],
        out_specs=(
            pl.BlockSpec((1, Sq, H * dh), lambda b: (b, 0, 0)),
            pl.BlockSpec((1, H, Sq, Sk), lambda b: (b, 0, 0, 0)),
        ),
        compiler_params=pltpu.CompilerParams(dimension_semantics=("parallel",)),
    )(q, k, v, mask_i8)

    # Recover the torch-shaped (B, H, Sq, dh) context with a cheap XLA
    # reshape/transpose (a surrounding MultiHeadAttention would consume the
    # lane-dense (B, Sq, H*dh) layout directly).
    context = ctx_flat.reshape(B, Sq, H, dh).transpose(0, 2, 1, 3)
    # TODO(synk): nn.Dropout(config.dropout) on attn_prob is identity (eval mode).
    return context, prob


# ----------------------------- main -----------------------------
if __name__ == "__main__":
    # Config implies n_head=4, d_head=64; small seq/batch for the demo.
    B, H, S, DH = 2, 4, 128, 64
    key = jax.random.PRNGKey(0)
    kq, kk, kv = jax.random.split(key, 3)
    q = jax.random.normal(kq, (B, H, S, DH), jnp.float32)
    k = jax.random.normal(kk, (B, H, S, DH), jnp.float32)
    v = jax.random.normal(kv, (B, H, S, DH), jnp.float32)

    # Key-padding mask (True = masked), as built upstream via inputs.eq(i_pad).
    key_is_pad = jnp.zeros((B, S), jnp.bool_).at[0, -5:].set(True).at[1, -2:].set(True)
    attn_mask = jnp.broadcast_to(key_is_pad[:, None, :], (B, S, S))

    fwd = jax.jit(scaled_dot_product_attention)
    ctx, prob = fwd(q, k, v, attn_mask)
    jax.block_until_ready((ctx, prob))

    # Pure-JAX reference with torch masked_fill(-1e9) semantics, f32 throughout.
    def ref(q, k, v, mask):
        s = jnp.einsum("bhqd,bhkd->bhqk", q, k) * (1.0 / math.sqrt(q.shape[-1]))
        s = jnp.where(mask[:, None, :, :], -1e9, s)
        p = jax.nn.softmax(s, axis=-1)
        return jnp.einsum("bhqk,bhkd->bhqd", p, v), p

    ref_ctx, ref_prob = ref(q, k, v, attn_mask)

    assert ctx.shape == (B, H, S, DH)
    assert prob.shape == (B, H, S, S)
    assert bool(jnp.all(jnp.isfinite(ctx))) and bool(jnp.all(jnp.isfinite(prob)))
    # Masked keys receive (numerically) zero probability.
    assert float(jnp.max(jnp.where(attn_mask[:, None, :, :], prob, 0.0))) < 1e-6
    # bf16-matmul / f32-accumulate vs f32 reference.
    assert float(jnp.max(jnp.abs(prob - ref_prob))) < 2e-2
    assert float(jnp.max(jnp.abs(ctx - ref_ctx))) < 1e-1
    print("KERNEL_OK")
</pallas_src>

<mosaic_0001>
module attributes {stable_mosaic.version = 11 : i64} {
  func.func @_sdpa_kernel(%arg0: i32, %arg1: memref<1x4x128x64xf32, #tpu.memory_space<vmem>>, %arg2: memref<1x4x128x64xf32, #tpu.memory_space<vmem>>, %arg3: memref<1x4x128x64xf32, #tpu.memory_space<vmem>>, %arg4: memref<1x128x128xi8, #tpu.memory_space<vmem>>, %arg5: memref<1x128x256xf32, #tpu.memory_space<vmem>>, %arg6: memref<1x4x128x128xf32, #tpu.memory_space<vmem>>) attributes {dimension_semantics = [#tpu.dimension_semantics<parallel>], iteration_bounds = array<i64: 2>, scalar_prefetch = 0 : i64, scratch_operands = 0 : i64, tpu.core_type = #tpu.core_type<tc>, window_params = [{transform_indices = @transform_0, window_bounds = array<i64: 1, 4, 128, 64>}, {transform_indices = @transform_1, window_bounds = array<i64: 1, 4, 128, 64>}, {transform_indices = @transform_2, window_bounds = array<i64: 1, 4, 128, 64>}, {transform_indices = @transform_3, window_bounds = array<i64: 1, 128, 128>}, {transform_indices = @transform_4, window_bounds = array<i64: 1, 128, 256>}, {transform_indices = @transform_5, window_bounds = array<i64: 1, 4, 128, 128>}]} {
    %c0 = arith.constant 0 : index
    %c0_0 = arith.constant 0 : index
    %c0_1 = arith.constant 0 : index
    %c0_2 = arith.constant 0 : index
    %0 = vector.load %arg1[%c0, %c0_0, %c0_1, %c0_2] : memref<1x4x128x64xf32, #tpu.memory_space<vmem>>, vector<1x4x128x64xf32>
    %1 = vector.shape_cast %0 : vector<1x4x128x64xf32> to vector<4x128x64xf32>
    %cst = arith.constant 1.250000e-01 : f32
    %2 = vector.broadcast %cst : f32 to vector<4x128x64xf32>
    %3 = arith.mulf %1, %2 : vector<4x128x64xf32>
    %4 = arith.truncf %3 : vector<4x128x64xf32> to vector<4x128x64xbf16>
    %c0_3 = arith.constant 0 : index
    %c0_4 = arith.constant 0 : index
    %c0_5 = arith.constant 0 : index
    %c0_6 = arith.constant 0 : index
    %5 = vector.load %arg2[%c0_3, %c0_4, %c0_5, %c0_6] : memref<1x4x128x64xf32, #tpu.memory_space<vmem>>, vector<1x4x128x64xf32>
    %6 = vector.shape_cast %5 : vector<1x4x128x64xf32> to vector<4x128x64xf32>
    %7 = arith.truncf %6 : vector<4x128x64xf32> to vector<4x128x64xbf16>
    %c0_7 = arith.constant 0 : index
    %c0_8 = arith.constant 0 : index
    %c0_9 = arith.constant 0 : index
    %c0_10 = arith.constant 0 : index
    %8 = vector.load %arg3[%c0_7, %c0_8, %c0_9, %c0_10] : memref<1x4x128x64xf32, #tpu.memory_space<vmem>>, vector<1x4x128x64xf32>
    %9 = vector.shape_cast %8 : vector<1x4x128x64xf32> to vector<4x128x64xf32>
    %10 = arith.truncf %9 : vector<4x128x64xf32> to vector<4x128x64xbf16>
    %c0_11 = arith.constant 0 : index
    %c0_12 = arith.constant 0 : index
    %c0_13 = arith.constant 0 : index
    %11 = vector.load %arg4[%c0_11, %c0_12, %c0_13] : memref<1x128x128xi8, #tpu.memory_space<vmem>>, vector<1x128x128xi8>
    %12 = vector.shape_cast %11 : vector<1x128x128xi8> to vector<128x128xi8>
    %13 = arith.sitofp %12 : vector<128x128xi8> to vector<128x128xf32>
    %cst_14 = arith.constant -1.000000e+09 : f32
    %14 = vector.broadcast %cst_14 : f32 to vector<128x128xf32>
    %15 = arith.mulf %13, %14 : vector<128x128xf32>
    "tpu.trace_start"() <{level = 10 : i32, message = "hqd,hkd->hqk"}> : () -> ()
    %cst_15 = arith.constant dense<0.000000e+00> : vector<4x128x128xf32>
    %16 = tpu.matmul %4, %7, %cst_15 {dimension_numbers = #tpu.dot_dimension_numbers<[2], [2], [1], [1], [0, 0, 0, 1, 1, 1], [0], [0]>} : vector<4x128x64xbf16>, vector<4x128x64xbf16>, vector<4x128x128xf32> -> vector<4x128x128xf32>
    "tpu.trace_stop"() : () -> ()
    %17 = vector.shape_cast %15 : vector<128x128xf32> to vector<1x128x128xf32>
    %18 = vector.broadcast %17 : vector<1x128x128xf32> to vector<4x128x128xf32>
    %19 = arith.addf %16, %18 : vector<4x128x128xf32>
    %cst_16 = arith.constant dense<0xFF800000> : vector<4x128xf32>
    %20 = vector.multi_reduction <maximumf>, %19, %cst_16 [2] : vector<4x128x128xf32> to vector<4x128xf32>
    %21 = vector.shape_cast %20 : vector<4x128xf32> to vector<4x128x1xf32>
    %22 = vector.broadcast %21 : vector<4x128x1xf32> to vector<4x128x128xf32>
    %23 = arith.subf %19, %22 : vector<4x128x128xf32>
    %24 = math.exp %23 : vector<4x128x128xf32>
    %cst_17 = arith.constant dense<0.000000e+00> : vector<4x128xf32>
    %25 = vector.multi_reduction <add>, %24, %cst_17 [2] : vector<4x128x128xf32> to vector<4x128xf32>
    %26 = vector.shape_cast %25 : vector<4x128xf32> to vector<4x128x1xf32>
    %27 = tpu.reciprocal %26 {approx = true} : vector<4x128x1xf32> -> vector<4x128x1xf32>
    %28 = vector.broadcast %27 : vector<4x128x1xf32> to vector<4x128x128xf32>
    %29 = arith.mulf %24, %28 : vector<4x128x128xf32>
    %c0_18 = arith.constant 0 : index
    %c0_19 = arith.constant 0 : index
    %c0_20 = arith.constant 0 : index
    %c0_21 = arith.constant 0 : index
    %30 = vector.load %arg6[%c0_18, %c0_19, %c0_20, %c0_21] : memref<1x4x128x128xf32, #tpu.memory_space<vmem>>, vector<1x4x128x128xf32>
    %31 = vector.shape_cast %30 : vector<1x4x128x128xf32> to vector<4x128x128xf32>
    %32 = vector.shape_cast %29 : vector<4x128x128xf32> to vector<1x4x128x128xf32>
    tpu.vector_store %arg6[%c0_18, %c0_19, %c0_20, %c0_21], %32 {strides = array<i32>} : memref<1x4x128x128xf32, #tpu.memory_space<vmem>>, vector<1x4x128x128xf32>,
    %33 = arith.truncf %29 : vector<4x128x128xf32> to vector<4x128x128xbf16>
    "tpu.trace_start"() <{level = 10 : i32, message = "hqk,hkd->hqd"}> : () -> ()
    %cst_22 = arith.constant dense<0.000000e+00> : vector<4x128x64xf32>
    %34 = tpu.matmul %33, %10, %cst_22 {dimension_numbers = #tpu.dot_dimension_numbers<[2], [1], [1], [2], [0, 0, 0, 1, 1, 2], [0], [0]>} : vector<4x128x128xbf16>, vector<4x128x64xbf16>, vector<4x128x64xf32> -> vector<4x128x64xf32>
    "tpu.trace_stop"() : () -> ()
    %35 = vector.extract_strided_slice %34 {offsets = [0, 0, 0], sizes = [1, 128, 64], strides = [1, 1, 1]} : vector<4x128x64xf32> to vector<1x128x64xf32>
    %36 = vector.shape_cast %35 : vector<1x128x64xf32> to vector<128x64xf32>
    %37 = vector.extract_strided_slice %34 {offsets = [1, 0, 0], sizes = [1, 128, 64], strides = [1, 1, 1]} : vector<4x128x64xf32> to vector<1x128x64xf32>
    %38 = vector.shape_cast %37 : vector<1x128x64xf32> to vector<128x64xf32>
    %39 = vector.extract_strided_slice %34 {offsets = [2, 0, 0], sizes = [1, 128, 64], strides = [1, 1, 1]} : vector<4x128x64xf32> to vector<1x128x64xf32>
    %40 = vector.shape_cast %39 : vector<1x128x64xf32> to vector<128x64xf32>
    %41 = vector.extract_strided_slice %34 {offsets = [3, 0, 0], sizes = [1, 128, 64], strides = [1, 1, 1]} : vector<4x128x64xf32> to vector<1x128x64xf32>
    %42 = vector.shape_cast %41 : vector<1x128x64xf32> to vector<128x64xf32>
    %43 = tpu.concatenate %36, %38, %40, %42 in 1 : vector<128x64xf32>, vector<128x64xf32>, vector<128x64xf32>, vector<128x64xf32> -> vector<128x256xf32>
    %c0_23 = arith.constant 0 : index
    %c0_24 = arith.constant 0 : index
    %c0_25 = arith.constant 0 : index
    %44 = vector.load %arg5[%c0_23, %c0_24, %c0_25] : memref<1x128x256xf32, #tpu.memory_space<vmem>>, vector<1x128x256xf32>
    %45 = vector.shape_cast %44 : vector<1x128x256xf32> to vector<128x256xf32>
    %46 = vector.shape_cast %43 : vector<128x256xf32> to vector<1x128x256xf32>
    tpu.vector_store %arg5[%c0_23, %c0_24, %c0_25], %46 {strides = array<i32>} : memref<1x128x256xf32, #tpu.memory_space<vmem>>, vector<1x128x256xf32>,
    return
  }
  func.func @transform_0(%arg0: i32) -> (i32, i32, i32, i32) {
    %c0_i32 = arith.constant 0 : i32
    %c0_i32_0 = arith.constant 0 : i32
    %c0_i32_1 = arith.constant 0 : i32
    %c0_i32_2 = arith.constant 0 : i32
    return %arg0, %c0_i32, %c0_i32_0, %c0_i32_1 : i32, i32, i32, i32
  }
  func.func @transform_1(%arg0: i32) -> (i32, i32, i32, i32) {
    %c0_i32 = arith.constant 0 : i32
    %c0_i32_0 = arith.constant 0 : i32
    %c0_i32_1 = arith.constant 0 : i32
    %c0_i32_2 = arith.constant 0 : i32
    return %arg0, %c0_i32, %c0_i32_0, %c0_i32_1 : i32, i32, i32, i32
  }
  func.func @transform_2(%arg0: i32) -> (i32, i32, i32, i32) {
    %c0_i32 = arith.constant 0 : i32
    %c0_i32_0 = arith.constant 0 : i32
    %c0_i32_1 = arith.constant 0 : i32
    %c0_i32_2 = arith.constant 0 : i32
    return %arg0, %c0_i32, %c0_i32_0, %c0_i32_1 : i32, i32, i32, i32
  }
  func.func @transform_3(%arg0: i32) -> (i32, i32, i32) {
    %c0_i32 = arith.constant 0 : i32
    %c0_i32_0 = arith.constant 0 : i32
    %c0_i32_1 = arith.constant 0 : i32
    return %arg0, %c0_i32, %c0_i32_0 : i32, i32, i32
  }
  func.func @transform_4(%arg0: i32) -> (i32, i32, i32) {
    %c0_i32 = arith.constant 0 : i32
    %c0_i32_0 = arith.constant 0 : i32
    %c0_i32_1 = arith.constant 0 : i32
    return %arg0, %c0_i32, %c0_i32_0 : i32, i32, i32
  }
  func.func @transform_5(%arg0: i32) -> (i32, i32, i32, i32) {
    %c0_i32 = arith.constant 0 : i32
    %c0_i32_0 = arith.constant 0 : i32
    %c0_i32_1 = arith.constant 0 : i32
    %c0_i32_2 = arith.constant 0 : i32
    return %arg0, %c0_i32, %c0_i32_0, %c0_i32_1 : i32, i32, i32, i32
  }
}

</mosaic_0001>

<bundles_post_ra>
// kernel: scaled_dot_product_attention.1
= control target key start
LH: loop header
LB: loop body
LE: loop exit
PB: predicated region body
PF: predicated region fallthrough
CT: control target
= control target key end

     0   :  { %11 = vsyncpa [#allocation3], 0  ;;  %s4831_s0 = inlined_call_operand.vmem [shape: f32[2,4,128,64], index: 0, kind: input, shape index: {}]   ;;  %s4832_s1 = inlined_call_operand.vmem [shape: f32[2,4,128,64], index: 1, kind: input, shape index: {}]   ;;  %s4833_s2 = inlined_call_operand.vmem [shape: f32[2,4,128,64], index: 2, kind: input, shape index: {}]   ;;  %s4834_s3 = inlined_call_operand.vmem [shape: s8[2,128,128], index: 3, kind: input, shape index: {}]   ;;  %s4835_s4 = inlined_call_operand.vmem [shape: f32[2,128,256], index: 4, kind: output, shape index: {0}]   ;;  %s4836_s5 = inlined_call_operand.hbm [shape: f32[2,4,128,128], index: 5, kind: output, shape index: {1}]  }
   0x1   :  { %13 = vsyncpa [#allocation3 + $0x1], 0  ;;  %s3549_s18 = smov 0   ;;  %s3551_s19 = smov 0  }
   0x2   :  { %s3553_s20 = smov 0   ;;  %s3555_s21 = smov 0  }
   0x3 LB: > { %s3570_s22 = sadd.s32 4294967295, %s3513_s21   ;;  %s2679_s23 = sadd.s32 4294967294, %s3513_s21   ;;  %s3513_s21 = sphi %s3555_s21, %s4938_s21   ;;  %s3509_s20 = sphi %s3553_s20, %s4937_s20   ;;  %s3505_s19 = sphi %s3551_s19, %s4936_s19   ;;  %s3501_s18 = sphi %s3549_s18, %s4935_s18  }
   0x4   : > { %s3574_s24 = sadd.s32 1, %s3513_s21   ;;  %s156_s25 = sadd.s32 1, %s3509_s20 }
   0x5   : > { %s153_s26 = ssub.s32 %s3513_s21, %s3574_s24  ;;  %p166_p0 = scmp.ne.s32.totalorder %s3509_s20, %s3505_s19 }
   0x6   : > { %p154_p1 = scmp.eq.s32.totalorder %s153_s26, 0  ;;  %p167_p2 = scmp.eq.s32.totalorder %s3570_s22, 1 }
   0x7   : > { %p172_p3 = scmp.ne.s32.totalorder %s3505_s19, %s3501_s18  ;;  %p173_p4 = scmp.eq.s32.totalorder %s2679_s23, 1 }
   0x8   : > { %s3585_s27 = scalar_select %p154_p1, %s3509_s20, %s156_s25  }
   0x9   : > { %p3587_p5 = por %p167_p2, %p166_p0  ;;  %p3591_p6 = por %p173_p4, %p172_p3 }
   0xa   : > { %p2682_p7 = scmp.ge.s32.totalorder %s3513_s21, 1  ;;  %p223_p8 = scmp.lt.s32.totalorder %s3513_s21, 3 }
   0xc   : > { %p224_p9 = pnand %p2682_p7, %p223_p8 }
   0xe   : > { %227 = sbr.rel (%p224_p9) target bundleno = 1078 (0x436), region = 36 }
  0x15   : > { %p271_p10 = scmp.lt.s32.totalorder %s3570_s22, 1  ;;  %vm701_vm0 = vcmask 523264   ;;  %s268_s26 = sand.u32 1, %s3505_s19  }
  0x16   : > { %s3515_s8 = smov 64   ;;  %s4716_s14 = scalar_lea.sflag [#allocation3], %s268_s26 }
  0x17   : > { %s3599_s30 = scalar_select %p271_p10, %s3570_s22, 1 }
  0x18   : > { %s3516_s15 = smov [#allocation2]  }
  0x19   : > { %s3602_s6 = sshll.u32 %s3599_s30, 9  ;;  %s2734_s13 = sshll.u32 %s3599_s30, 5 }
  0x1a   : > { %s3608_s9 = scalar_lea.vmem %s4832_s1, %s3602_s6  ;;  %s3632_s12 = scalar_lea.vmem %s4831_s0, %s3602_s6 }
  0x1b   : > { %v457_v0 = vld [vmem:[%s3608_s9] sm:$0xff]  ;;  %v458_v1 = vld [vmem:[%s3608_s9 + $0x8] sm:$0xff]  ;;  %v459_v5 = vld [vmem:[%s3608_s9 + $0x10] sm:$0xff]  ;;  %s3844_s16 = scalar_lea.vmem %s4834_s3, %s2734_s13  ;;  %s4169_s25 = scalar_lea.vmem %s4833_s2, %s3602_s6 }
  0x1c   : > { %v473_v2 = vld [vmem:[%s3608_s9 + $0x80] sm:$0xff]  ;;  %v521_v3 = vpack.c.bf16 %v458_v1, %v457_v0  ;;  %v474_v4 = vld [vmem:[%s3608_s9 + $0x88] sm:$0xff]  ;;  %v460_v6 = vld [vmem:[%s3608_s9 + $0x18] sm:$0xff]  ;;  %s2683_s6 = sshll.u32 %s268_s26, 9 }
  0x1d   : > { %v529_v7 = vpack.c.bf16 %v474_v4, %v473_v2  ;;  %v522_v8 = vpack.c.bf16 %v460_v6, %v459_v5  ;;  %v475_v9 = vld [vmem:[%s3608_s9 + $0x90] sm:$0xff]  ;;  %v476_v10 = vld [vmem:[%s3608_s9 + $0x98] sm:$0xff]  ;;  %v461_v14 = vld [vmem:[%s3608_s9 + $0x20] sm:$0xff]  ;;  %s4504_s7 = scalar_lea.vmem [#allocation2], %s2683_s6 }
  0x1e   : > { %3121 = vmatprep.subr.msk.bf16.mxu0 %vm701_vm0, %v521_v3  ;;  %v727_v11 = vsel %vm701_vm0, %v521_v3, 0  ;;  %v530_v12 = vpack.c.bf16 %v476_v10, %v475_v9  ;;  %v462_v15 = vld [vmem:[%s3608_s9 + $0x28] sm:$0xff]  ;;  %v477_v16 = vld [vmem:[%s3608_s9 + $0xa0] sm:$0xff]  ;;  %v463_v30 = vld [vmem:[%s3608_s9 + $0x30] sm:$0xff]  ;;  %s2556_s10 = sshll.u32 %s4504_s7, 4  ;;  %s4711_s10 = int_to_ptr.vmem [resolvable:$true] %s2556_s10 }
  0x1f   : > { %3129 = vmatprep.subr.msk.bf16.mxu1 %vm701_vm0, %v529_v7  ;;  %2866 = vmatpush3.bf16.xpose.msra.mxu0 %v727_v11  ;;  %v872_v13 = vsel %vm701_vm0, %v529_v7, 0  ;;  %v478_v17 = vld [vmem:[%s3608_s9 + $0xa8] sm:$0xff]  ;;  %v730_v18 = vsel %vm701_vm0, %v522_v8, 0  ;;  %v523_v19 = vpack.c.bf16 %v462_v15, %v461_v14  ;;  %v297_v22 = vld [vmem:[%s3632_s12] sm:$0xff]  ;;  %v464_v31 = vld [vmem:[%s3608_s9 + $0x38] sm:$0xff] }
  0x20   : > { %2898 = vmatpush3.bf16.xpose.msra.mxu1 %v872_v13  ;;  %3122 = vmatprep.subr.msk.bf16.mxu0 %vm701_vm0, %v522_v8  ;;  %v875_v20 = vsel %vm701_vm0, %v530_v12, 0  ;;  %v531_v21 = vpack.c.bf16 %v478_v17, %v477_v16  ;;  %v298_v23 = vld [vmem:[%s3632_s12 + $0x8] sm:$0xff]  ;;  %v361_v24 = vmul.f32 0.125, %v297_v22  ;;  %v313_v25 = vld [vmem:[%s3632_s12 + $0x80] sm:$0xff]  ;;  %v479_v33 = vld [vmem:[%s3608_s9 + $0xb0] sm:$0xff]  ;;  %v524_v37 = vpack.c.bf16 %v464_v31, %v463_v30 }
  0x21   : > { %3130 = vmatprep.subr.msk.bf16.mxu1 %vm701_vm0, %v530_v12  ;;  %v314_v26 = vld [vmem:[%s3632_s12 + $0x88] sm:$0xff]  ;;  %v362_v27 = vmul.f32 0.125, %v298_v23  ;;  %v377_v28 = vmul.f32 0.125, %v313_v25  ;;  %v480_v34 = vld [vmem:[%s3608_s9 + $0xb8] sm:$0xff]  ;;  %v733_v36 = vsel %vm701_vm0, %v523_v19, 0  ;;  %v465_v40 = vld [vmem:[%s3608_s9 + $0x40] sm:$0xff] }
  0x22   : > { %v378_v29 = vmul.f32 0.125, %v314_v26  ;;  %v878_v38 = vsel %vm701_vm0, %v531_v21, 0  ;;  %v532_v39 = vpack.c.bf16 %v480_v34, %v479_v33  ;;  %v466_v41 = vld [vmem:[%s3608_s9 + $0x48] sm:$0xff]  ;;  %v481_v42 = vld [vmem:[%s3608_s9 + $0xc0] sm:$0xff]  ;;  %v736_v44 = vsel %vm701_vm0, %v524_v37, 0  ;;  %v467_v48 = vld [vmem:[%s3608_s9 + $0x50] sm:$0xff] }
  0x23   : > { %v425_v32 = vpack.c.bf16 %v362_v27, %v361_v24  ;;  %v482_v43 = vld [vmem:[%s3608_s9 + $0xc8] sm:$0xff]  ;;  %v525_v45 = vpack.c.bf16 %v466_v41, %v465_v40  ;;  %v468_v49 = vld [vmem:[%s3608_s9 + $0x58] sm:$0xff]  ;;  %v483_v50 = vld [vmem:[%s3608_s9 + $0xd0] sm:$0xff] }
  0x24   : > { %v433_v35 = vpack.c.bf16 %v378_v29, %v377_v28  ;;  %v881_v46 = vsel %vm701_vm0, %v532_v39, 0  ;;  %v533_v47 = vpack.c.bf16 %v482_v43, %v481_v42  ;;  %v484_v51 = vld [vmem:[%s3608_s9 + $0xd8] sm:$0xff]  ;;  %v526_v53 = vpack.c.bf16 %v468_v49, %v467_v48  ;;  %v469_v56 = vld [vmem:[%s3608_s9 + $0x60] sm:$0xff]  ;;  %v470_v57 = vld [vmem:[%s3608_s9 + $0x68] sm:$0xff] }
  0x25   : > { %2881 = vmatprep.mubr.msk.bf16.mxu0 %vm701_vm0, %v425_v32  ;;  %v739_v52 = vsel %vm701_vm0, %v525_v45, 0  ;;  %v534_v55 = vpack.c.bf16 %v484_v51, %v483_v50  ;;  %v485_v58 = vld [vmem:[%s3608_s9 + $0xe0] sm:$0xff]  ;;  %v486_v59 = vld [vmem:[%s3608_s9 + $0xe8] sm:$0xff]  ;;  %v527_v61 = vpack.c.bf16 %v470_v57, %v469_v56  ;;  %v471_v0 = vld [vmem:[%s3608_s9 + $0x70] sm:$0xff] }
  0x26   : > { %2913 = vmatprep.mubr.msk.bf16.mxu1 %vm701_vm0, %v433_v35  ;;  %v884_v54 = vsel %vm701_vm0, %v533_v47, 0  ;;  %v742_v60 = vsel %vm701_vm0, %v526_v53, 0  ;;  %v535_v63 = vpack.c.bf16 %v486_v59, %v485_v58  ;;  %v472_v1 = vld [vmem:[%s3608_s9 + $0x78] sm:$0xff]  ;;  %v487_v2 = vld [vmem:[%s3608_s9 + $0xf0] sm:$0xff]  ;;  %v489_v8 = vld [vmem:[%s3608_s9 + $0x100] sm:$0xff] }
  0x27   : > { %2868 = vmatpush3.bf16.xpose.msra.mxu0 %v730_v18  ;;  %v887_v62 = vsel %vm701_vm0, %v534_v55, 0  ;;  %v488_v3 = vld [vmem:[%s3608_s9 + $0xf8] sm:$0xff]  ;;  %v745_v4 = vsel %vm701_vm0, %v527_v61, 0  ;;  %v528_v5 = vpack.c.bf16 %v472_v1, %v471_v0  ;;  %v490_v9 = vld [vmem:[%s3608_s9 + $0x108] sm:$0xff]  ;;  %v505_v10 = vld [vmem:[%s3608_s9 + $0x180] sm:$0xff] }
  0x28   : > { %2900 = vmatpush3.bf16.xpose.msra.mxu1 %v875_v20  ;;  %3123 = vmatprep.subr.msk.bf16.mxu0 %vm701_vm0, %v523_v19  ;;  %v890_v6 = vsel %vm701_vm0, %v535_v63, 0  ;;  %v536_v7 = vpack.c.bf16 %v488_v3, %v487_v2  ;;  %v506_v11 = vld [vmem:[%s3608_s9 + $0x188] sm:$0xff]  ;;  %v299_v12 = vld [vmem:[%s3632_s12 + $0x10] sm:$0xff]  ;;  %v300_v13 = vld [vmem:[%s3632_s12 + $0x18] sm:$0xff]  ;;  %v537_v17 = vpack.c.bf16 %v490_v9, %v489_v8 }
  0x29   : > { %3131 = vmatprep.subr.msk.bf16.mxu1 %vm701_vm0, %v531_v21  ;;  %v748_v14 = vsel %vm701_vm0, %v528_v5, 0  ;;  %v315_v15 = vld [vmem:[%s3632_s12 + $0x90] sm:$0xff]  ;;  %v316_v16 = vld [vmem:[%s3632_s12 + $0x98] sm:$0xff]  ;;  %v545_v19 = vpack.c.bf16 %v506_v11, %v505_v10  ;;  %v363_v20 = vmul.f32 0.125, %v299_v12  ;;  %v364_v21 = vmul.f32 0.125, %v300_v13  ;;  %v317_v22 = vld [vmem:[%s3632_s12 + $0xa0] sm:$0xff] }
  0x2a   : > { %v893_v18 = vsel %vm701_vm0, %v536_v7, 0  ;;  %v318_v23 = vld [vmem:[%s3632_s12 + $0xa8] sm:$0xff]  ;;  %v379_v24 = vmul.f32 0.125, %v315_v15  ;;  %v380_v25 = vmul.f32 0.125, %v316_v16  ;;  %v301_v26 = vld [vmem:[%s3632_s12 + $0x20] sm:$0xff]  ;;  %v491_v28 = vld [vmem:[%s3608_s9 + $0x110] sm:$0xff] }
  0x2b   : > { %v302_v27 = vld [vmem:[%s3632_s12 + $0x28] sm:$0xff]  ;;  %v492_v29 = vld [vmem:[%s3608_s9 + $0x118] sm:$0xff]  ;;  %v381_v30 = vmul.f32 0.125, %v317_v22  ;;  %v382_v31 = vmul.f32 0.125, %v318_v23  ;;  %v426_v32 = vpack.c.bf16 %v364_v21, %v363_v20  ;;  %v507_v33 = vld [vmem:[%s3608_s9 + $0x190] sm:$0xff]  ;;  %v365_v35 = vmul.f32 0.125, %v301_v26 }
  0x2c   : > { %v508_v34 = vld [vmem:[%s3608_s9 + $0x198] sm:$0xff]  ;;  %v1017_v40 = vsel %vm701_vm0, %v537_v17, 0  ;;  %v538_v41 = vpack.c.bf16 %v492_v29, %v491_v28  ;;  %v319_v42 = vld [vmem:[%s3632_s12 + $0xb0] sm:$0xff]  ;;  %v321_v50 = vld [vmem:[%s3632_s12 + $0xc0] sm:$0xff] }
  0x2d   : > { %v320_v43 = vld [vmem:[%s3632_s12 + $0xb8] sm:$0xff]  ;;  %v322_v51 = vld [vmem:[%s3632_s12 + $0xc8] sm:$0xff]  ;;  %v493_v56 = vld [vmem:[%s3608_s9 + $0x120] sm:$0xff]  ;;  %v385_v58 = vmul.f32 0.125, %v321_v50 }
  0x2e   : > { %v494_v57 = vld [vmem:[%s3608_s9 + $0x128] sm:$0xff]  ;;  %v386_v59 = vmul.f32 0.125, %v322_v51  ;;  %v307_v2 = vld [vmem:[%s3632_s12 + $0x50] sm:$0xff]  ;;  %v308_v3 = vld [vmem:[%s3632_s12 + $0x58] sm:$0xff] }
  0x2f   : > { %2870 = vmatpush3.bf16.xpose.msra.mxu0 %v733_v36  ;;  %v366_v36 = vmul.f32 0.125, %v302_v27  ;;  %v371_v12 = vmul.f32 0.125, %v307_v2  ;;  %v372_v13 = vmul.f32 0.125, %v308_v3  ;;  %v326_v15 = vld [vmem:[%s3632_s12 + $0xe8] sm:$0xff]  ;;  %v495_v20 = vld [vmem:[%s3608_s9 + $0x130] sm:$0xff]  ;;  %v496_v21 = vld [vmem:[%s3608_s9 + $0x138] sm:$0xff] }
  0x30   : > { %2902 = vmatpush3.bf16.xpose.msra.mxu1 %v878_v38  ;;  %3124 = vmatprep.subr.msk.bf16.mxu0 %vm701_vm0, %v524_v37  ;;  %v434_v37 = vpack.c.bf16 %v380_v25, %v379_v24  ;;  %v303_v38 = vld [vmem:[%s3632_s12 + $0x30] sm:$0xff]  ;;  %v437_v10 = vpack.c.bf16 %v386_v59, %v385_v58  ;;  %v390_v23 = vmul.f32 0.125, %v326_v15  ;;  %v512_v25 = vld [vmem:[%s3608_s9 + $0x1b8] sm:$0xff] }
  0x31   : > { %3132 = vmatprep.subr.msk.bf16.mxu1 %vm701_vm0, %v532_v39  ;;  %v304_v39 = vld [vmem:[%s3632_s12 + $0x38] sm:$0xff]  ;;  %v367_v48 = vmul.f32 0.125, %v303_v38  ;;  %v511_v24 = vld [vmem:[%s3608_s9 + $0x1b0] sm:$0xff]  ;;  %v430_v26 = vpack.c.bf16 %v372_v13, %v371_v12 }
  0x32   : > { %v368_v49 = vmul.f32 0.125, %v304_v39  ;;  %v515_v2 = vld [vmem:[%s3608_s9 + $0x1d0] sm:$0xff]  ;;  %v516_v3 = vld [vmem:[%s3608_s9 + $0x1d8] sm:$0xff] }
  0x37   : > { %2872 = vmatpush3.bf16.xpose.msra.mxu0 %v736_v44  ;;  %v1162_v44 = vsel %vm701_vm0, %v545_v19, 0 }
  0x38   : > { %2904 = vmatpush3.bf16.xpose.msra.mxu1 %v881_v46  ;;  %3125 = vmatprep.subr.msk.bf16.mxu0 %vm701_vm0, %v525_v45  ;;  %v546_v45 = vpack.c.bf16 %v508_v34, %v507_v33  ;;  %v435_v46 = vpack.c.bf16 %v382_v31, %v381_v30  ;;  %v311_v30 = vld [vmem:[%s3632_s12 + $0x70] sm:$0xff]  ;;  %v312_v31 = vld [vmem:[%s3632_s12 + $0x78] sm:$0xff]  ;;  %v540_v33 = vpack.c.bf16 %v496_v21, %v495_v20 }
  0x39   : > { %3133 = vmatprep.subr.msk.bf16.mxu1 %vm701_vm0, %v533_v47  ;;  %v427_v47 = vpack.c.bf16 %v366_v36, %v365_v35  ;;  %v327_v34 = vld [vmem:[%s3632_s12 + $0xf0] sm:$0xff]  ;;  %v328_v35 = vld [vmem:[%s3632_s12 + $0xf8] sm:$0xff] }
  0x3a   : > { %v1165_v8 = vsel %vm701_vm0, %v546_v45, 0  ;;  %v1026_v58 = vsel %vm701_vm0, %v540_v33, 0 }
  0x3f   : > { %2874 = vmatpush3.bf16.xpose.msra.mxu0 %v739_v52  ;;  %v383_v52 = vmul.f32 0.125, %v319_v42  ;;  %v345_v42 = vld [vmem:[%s3632_s12 + $0x180] sm:$0xff] }
  0x40   : > { %2906 = vmatpush3.bf16.xpose.msra.mxu1 %v884_v54  ;;  %3126 = vmatprep.subr.msk.bf16.mxu0 %vm701_vm0, %v526_v53  ;;  %v384_v53 = vmul.f32 0.125, %v320_v43  ;;  %v305_v54 = vld [vmem:[%s3632_s12 + $0x40] sm:$0xff]  ;;  %v346_v43 = vld [vmem:[%s3632_s12 + $0x188] sm:$0xff]  ;;  %v409_v50 = vmul.f32 0.125, %v345_v42 }
  0x41   : > { %3134 = vmatprep.subr.msk.bf16.mxu1 %vm701_vm0, %v534_v55  ;;  %v306_v55 = vld [vmem:[%s3632_s12 + $0x48] sm:$0xff]  ;;  %v410_v51 = vmul.f32 0.125, %v346_v43 }
  0x42   : > { %v370_v0 = vmul.f32 0.125, %v306_v55  ;;  %v436_v1 = vpack.c.bf16 %v384_v53, %v383_v52  ;;  %v513_v52 = vld [vmem:[%s3608_s9 + $0x1c0] sm:$0xff]  ;;  %v514_v53 = vld [vmem:[%s3608_s9 + $0x1c8] sm:$0xff] }
  0x47   : > { %2876 = vmatpush3.bf16.xpose.msra.mxu0 %v742_v60  ;;  %v509_v60 = vld [vmem:[%s3608_s9 + $0x1a0] sm:$0xff] }
  0x48   : > { %2908 = vmatpush3.bf16.xpose.msra.mxu1 %v887_v62  ;;  %3127 = vmatprep.subr.msk.bf16.mxu0 %vm701_vm0, %v527_v61  ;;  %v510_v61 = vld [vmem:[%s3608_s9 + $0x1a8] sm:$0xff]  ;;  %v428_v62 = vpack.c.bf16 %v368_v49, %v367_v48  ;;  %v497_v48 = vld [vmem:[%s3608_s9 + $0x140] sm:$0xff] }
  0x49   : > { %3135 = vmatprep.subr.msk.bf16.mxu1 %vm701_vm0, %v535_v63  ;;  %v369_v63 = vmul.f32 0.125, %v305_v54  ;;  %v547_v9 = vpack.c.bf16 %v510_v61, %v509_v60  ;;  %v498_v49 = vld [vmem:[%s3608_s9 + $0x148] sm:$0xff]  ;;  %v549_v61 = vpack.c.bf16 %v514_v53, %v513_v52  ;;  %v353_v52 = vld [vmem:[%s3632_s12 + $0x1c0] sm:$0xff] }
  0x4a   : > { %v541_v59 = vpack.c.bf16 %v498_v49, %v497_v48  ;;  %v352_v49 = vld [vmem:[%s3632_s12 + $0x1b8] sm:$0xff]  ;;  %v354_v53 = vld [vmem:[%s3632_s12 + $0x1c8] sm:$0xff] }
  0x4b   : > { %v429_v11 = vpack.c.bf16 %v370_v0, %v369_v63  ;;  %v1168_v36 = vsel %vm701_vm0, %v547_v9, 0  ;;  %v499_v0 = vld [vmem:[%s3608_s9 + $0x150] sm:$0xff] }
  0x4f   : > { %2878 = vmatpush3.bf16.xpose.msra.mxu0 %v745_v4  ;;  %v1020_v4 = vsel %vm701_vm0, %v538_v41, 0 }
  0x50   : > { %2910 = vmatpush3.bf16.xpose.msra.mxu1 %v890_v6  ;;  %3128 = vmatprep.subr.msk.bf16.mxu0 %vm701_vm0, %v528_v5  ;;  %v539_v5 = vpack.c.bf16 %v494_v57, %v493_v56  ;;  %v323_v6 = vld [vmem:[%s3632_s12 + $0xd0] sm:$0xff] }
  0x51   : > { %3136 = vmatprep.subr.msk.bf16.mxu1 %vm701_vm0, %v536_v7  ;;  %v324_v7 = vld [vmem:[%s3632_s12 + $0xd8] sm:$0xff]  ;;  %v387_v16 = vmul.f32 0.125, %v323_v6  ;;  %v1174_v6 = vsel %vm701_vm0, %v549_v61, 0 }
  0x57   : > { %2880 = vmatpush3.bf16.xpose.msra.mxu0 %v748_v14  ;;  %v325_v14 = vld [vmem:[%s3632_s12 + $0xe0] sm:$0xff] }
  0x58   : > { %2912 = vmatpush3.bf16.xpose.msra.mxu1 %v893_v18  ;;  %3137 = vmatprep.subr.msk.bf16.mxu0 %vm701_vm0, %v537_v17  ;;  %v388_v17 = vmul.f32 0.125, %v324_v7  ;;  %v309_v18 = vld [vmem:[%s3632_s12 + $0x60] sm:$0xff]  ;;  %v389_v22 = vmul.f32 0.125, %v325_v14  ;;  %v550_v7 = vpack.c.bf16 %v516_v3, %v515_v2  ;;  %v339_v2 = vld [vmem:[%s3632_s12 + $0x150] sm:$0xff]  ;;  %v340_v3 = vld [vmem:[%s3632_s12 + $0x158] sm:$0xff] }
  0x59   : > { %3145 = vmatprep.subr.msk.bf16.mxu1 %vm701_vm0, %v545_v19  ;;  %v310_v19 = vld [vmem:[%s3632_s12 + $0x68] sm:$0xff]  ;;  %v373_v27 = vmul.f32 0.125, %v309_v18  ;;  %v519_v18 = vld [vmem:[%s3608_s9 + $0x1f0] sm:$0xff] }
  0x5a   : > { %v374_v28 = vmul.f32 0.125, %v310_v19  ;;  %v438_v29 = vpack.c.bf16 %v388_v17, %v387_v16  ;;  %v439_v38 = vpack.c.bf16 %v390_v23, %v389_v22  ;;  %v1177_v14 = vsel %vm701_vm0, %v550_v7, 0  ;;  %v503_v16 = vld [vmem:[%s3608_s9 + $0x170] sm:$0xff]  ;;  %v504_v17 = vld [vmem:[%s3608_s9 + $0x178] sm:$0xff] }
  0x5b   : > { %v520_v19 = vld [vmem:[%s3608_s9 + $0x1f8] sm:$0xff]  ;;  %v544_v21 = vpack.c.bf16 %v504_v17, %v503_v16 }
  0x5c   : > { %v431_v39 = vpack.c.bf16 %v374_v28, %v373_v27  ;;  %v552_v23 = vpack.c.bf16 %v520_v19, %v519_v18  ;;  %v348_v28 = vld [vmem:[%s3632_s12 + $0x198] sm:$0xff] }
  0x5d   : > { %v1038_v27 = vsel %vm701_vm0, %v544_v21, 0 }
  0x5e   : > { %2882 = vmatmul.mubr.msk.bf16.vlgmr.msra.gmra.mrb[0].mxu0 %vm701_vm0, %v426_v32  ;;  %v1023_v32 = vsel %vm701_vm0, %v539_v5, 0 }
  0x5f   : > { %2914 = vmatmul.mubr.msk.bf16.vlgmr.msra.gmra.mrb[0].mxu1 %vm701_vm0, %v434_v37  ;;  %2930 = vmatpush3.bf16.xpose.msra.mxu0 %v1017_v40  ;;  %v548_v37 = vpack.c.bf16 %v512_v25, %v511_v24  ;;  %v375_v40 = vmul.f32 0.125, %v311_v30  ;;  %v347_v24 = vld [vmem:[%s3632_s12 + $0x190] sm:$0xff]  ;;  %v334_v30 = vld [vmem:[%s3632_s12 + $0x128] sm:$0xff] }
  0x60   : > { %2962 = vmatpush3.bf16.xpose.msra.mxu1 %v1162_v44  ;;  %3138 = vmatprep.subr.msk.bf16.mxu0 %vm701_vm0, %v538_v41  ;;  %v376_v41 = vmul.f32 0.125, %v312_v31  ;;  %v391_v44 = vmul.f32 0.125, %v327_v34  ;;  %v331_v25 = vld [vmem:[%s3632_s12 + $0x110] sm:$0xff]  ;;  %v1183_v31 = vsel %vm701_vm0, %v552_v23, 0 }
  0x61   : > { %3146 = vmatprep.subr.msk.bf16.mxu1 %vm701_vm0, %v546_v45  ;;  %2917 = vmatprep.mubr.msk.bf16.mxu1 %vm701_vm0, %v435_v46  ;;  %v392_v45 = vmul.f32 0.125, %v328_v35  ;;  %v329_v46 = vld [vmem:[%s3632_s12 + $0x100] sm:$0xff]  ;;  %v1171_v60 = vsel %vm701_vm0, %v548_v37, 0  ;;  %v395_v34 = vmul.f32 0.125, %v331_v25  ;;  %v360_v25 = vld [vmem:[%s3632_s12 + $0x1f8] sm:$0xff] }
  0x62   : > { %2885 = vmatprep.mubr.msk.bf16.mxu0 %vm701_vm0, %v427_v47  ;;  %v330_v47 = vld [vmem:[%s3632_s12 + $0x108] sm:$0xff]  ;;  %v432_v54 = vpack.c.bf16 %v376_v41, %v375_v40  ;;  %v393_v55 = vmul.f32 0.125, %v329_v46  ;;  %v335_v46 = vld [vmem:[%s3632_s12 + $0x130] sm:$0xff] }
  0x63   : > { %v394_v56 = vmul.f32 0.125, %v330_v47  ;;  %v440_v57 = vpack.c.bf16 %v392_v45, %v391_v44  ;;  %v351_v44 = vld [vmem:[%s3632_s12 + $0x1b0] sm:$0xff]  ;;  %v336_v47 = vld [vmem:[%s3632_s12 + $0x138] sm:$0xff] }
  0x65   : > { %v441_v63 = vpack.c.bf16 %v394_v56, %v393_v55  ;;  %v400_v55 = vmul.f32 0.125, %v336_v47  ;;  %v415_v56 = vmul.f32 0.125, %v351_v44 }
  0x66   : > { %2886 = vmatmul.mubr.msk.bf16.gmra.mrb[4].mxu0 %vm701_vm0, %v428_v62  ;;  %v449_v62 = vpack.c.bf16 %v410_v51, %v409_v50  ;;  %v337_v50 = vld [vmem:[%s3632_s12 + $0x140] sm:$0xff]  ;;  %v338_v51 = vld [vmem:[%s3632_s12 + $0x148] sm:$0xff] }
  0x67   : > { %2932 = vmatpush3.bf16.xpose.msra.mxu0 %v1020_v4  ;;  %2918 = vmatmul.mubr.msk.bf16.gmra.mrb[4].mxu1 %vm701_vm0, %v436_v1  ;;  %v500_v1 = vld [vmem:[%s3608_s9 + $0x158] sm:$0xff]  ;;  %v1029_v4 = vsel %vm701_vm0, %v541_v59, 0 }
  0x68   : > { %2964 = vmatpush3.bf16.xpose.msra.mxu1 %v1165_v8  ;;  %3139 = vmatprep.subr.msk.bf16.mxu0 %vm701_vm0, %v539_v5  ;;  %v542_v5 = vpack.c.bf16 %v500_v1, %v499_v0  ;;  %v501_v8 = vld [vmem:[%s3608_s9 + $0x160] sm:$0xff]  ;;  %v355_v0 = vld [vmem:[%s3632_s12 + $0x1d0] sm:$0xff] }
  0x69   : > { %3147 = vmatprep.subr.msk.bf16.mxu1 %vm701_vm0, %v547_v9  ;;  %2921 = vmatprep.mubr.msk.bf16.mxu1 %vm701_vm0, %v437_v10  ;;  %v502_v9 = vld [vmem:[%s3608_s9 + $0x168] sm:$0xff]  ;;  %v517_v10 = vld [vmem:[%s3608_s9 + $0x1e0] sm:$0xff] }
  0x6a   : > { %2889 = vmatprep.mubr.msk.bf16.mxu0 %vm701_vm0, %v429_v11  ;;  %v518_v11 = vld [vmem:[%s3608_s9 + $0x1e8] sm:$0xff]  ;;  %v1032_v12 = vsel %vm701_vm0, %v542_v5, 0  ;;  %v543_v13 = vpack.c.bf16 %v502_v9, %v501_v8  ;;  %v357_v8 = vld [vmem:[%s3632_s12 + $0x1e0] sm:$0xff]  ;;  %s2736_s9 = sshll.u32 %s3570_s22, 13  ;;  %s3451_s22 = scalar_lea.vmem %s4711_s10, 8192 }
  0x6b   : > { %v551_v15 = vpack.c.bf16 %v518_v11, %v517_v10  ;;  %v358_v9 = vld [vmem:[%s3632_s12 + $0x1e8] sm:$0xff]  ;;  %v403_v10 = vmul.f32 0.125, %v339_v2  ;;  %v404_v11 = vmul.f32 0.125, %v340_v3  ;;  %v421_v16 = vmul.f32 0.125, %v357_v8  ;;  %s4708_s13 = scalar_lea.hbm %s4836_s5, %s2736_s9  ;;  %p3452_p11 = scmp.ne.s32.totalorder %s4711_s10, %s3451_s22 }
  0x6c   : > { %v1035_v20 = vsel %vm701_vm0, %v543_v13, 0  ;;  %v422_v17 = vmul.f32 0.125, %v358_v9 }
  0x6d   : > { %v1180_v22 = vsel %vm701_vm0, %v551_v15, 0  ;;  %v446_v18 = vpack.c.bf16 %v404_v11, %v403_v10  ;;  %p3453_p12 = pnand %p3452_p11, %p3587_p5 }
  0x6e   : > { %2890 = vmatmul.mubr.msk.bf16.gmra.mrb[8].mxu0 %vm701_vm0, %v430_v26  ;;  %v332_v26 = vld [vmem:[%s3632_s12 + $0x118] sm:$0xff] }
  0x6f   : > { %2934 = vmatpush3.bf16.xpose.msra.mxu0 %v1023_v32  ;;  %2922 = vmatmul.mubr.msk.bf16.gmra.mrb[8].mxu1 %vm701_vm0, %v438_v29  ;;  %v333_v29 = vld [vmem:[%s3632_s12 + $0x120] sm:$0xff]  ;;  %v396_v35 = vmul.f32 0.125, %v332_v26  ;;  %p3454_p13 = pneg %p3453_p12 }
  0x70   : > { %2966 = vmatpush3.bf16.xpose.msra.mxu1 %v1168_v36  ;;  %3140 = vmatprep.subr.msk.bf16.mxu0 %vm701_vm0, %v540_v33  ;;  %v349_v32 = vld [vmem:[%s3632_s12 + $0x1a0] sm:$0xff]  ;;  %v350_v33 = vld [vmem:[%s3632_s12 + $0x1a8] sm:$0xff]  ;;  %v411_v36 = vmul.f32 0.125, %v347_v24  ;;  %v359_v24 = vld [vmem:[%s3632_s12 + $0x1f0] sm:$0xff] }
  0x71   : > { %3148 = vmatprep.subr.msk.bf16.mxu1 %vm701_vm0, %v548_v37  ;;  %2925 = vmatprep.mubr.msk.bf16.mxu1 %vm701_vm0, %v439_v38  ;;  %v412_v37 = vmul.f32 0.125, %v348_v28  ;;  %v397_v38 = vmul.f32 0.125, %v333_v29  ;;  %v413_v40 = vmul.f32 0.125, %v349_v32  ;;  %v414_v41 = vmul.f32 0.125, %v350_v33  ;;  %v649_v32 = vld [vmem:[%s3844_s16] sm:$0xff] }
  0x72   : > { %2893 = vmatprep.mubr.msk.bf16.mxu0 %vm701_vm0, %v431_v39  ;;  %v398_v39 = vmul.f32 0.125, %v334_v30  ;;  %v442_v42 = vpack.c.bf16 %v396_v35, %v395_v34  ;;  %v423_v28 = vmul.f32 0.125, %v359_v24  ;;  %v424_v29 = vmul.f32 0.125, %v360_v25 }
  0x73   : > { %v450_v43 = vpack.c.bf16 %v412_v37, %v411_v36  ;;  %v451_v48 = vpack.c.bf16 %v414_v41, %v413_v40  ;;  %v655_v33 = vunpack.c.2.s8 %v649_v32  ;;  %v653_v35 = vunpack.c.0.s8 %v649_v32  ;;  %v650_v41 = vld [vmem:[%s3844_s16 + $0x8] sm:$0xff] }
  0x74   : > { %v443_v45 = vpack.c.bf16 %v398_v39, %v397_v38  ;;  %v656_v36 = vunpack.c.3.s8 %v649_v32  ;;  %v657_v11 = vunpack.c.0.s8 %v650_v41 }
  0x75   : > { %v671_v34 = vcvt.s32.f32 %v655_v33  ;;  %v669_v38 = vcvt.s32.f32 %v653_v35 }
  0x76   : > { %2894 = vmatmul.mubr.msk.bf16.gmra.mrb[12].mxu0 %vm701_vm0, %v432_v54  ;;  %v399_v54 = vmul.f32 0.125, %v335_v46  ;;  %v672_v39 = vcvt.s32.f32 %v656_v36  ;;  %v654_v46 = vunpack.c.1.s8 %v649_v32 }
  0x77   : > { %2936 = vmatpush3.bf16.xpose.msra.mxu0 %v1026_v58  ;;  %2926 = vmatmul.mubr.msk.bf16.gmra.mrb[12].mxu1 %vm701_vm0, %v440_v57  ;;  %v416_v57 = vmul.f32 0.125, %v352_v49  ;;  %v401_v58 = vmul.f32 0.125, %v337_v50  ;;  %v3847_v37 = vmul.f32 -1e+09, %v671_v34  ;;  %v3853_v44 = vmul.f32 -1e+09, %v669_v38 }
  0x78   : > { %2968 = vmatpush3.bf16.xpose.msra.mxu1 %v1171_v60  ;;  %3141 = vmatprep.subr.msk.bf16.mxu0 %vm701_vm0, %v541_v59  ;;  %v402_v59 = vmul.f32 0.125, %v338_v51  ;;  %v417_v60 = vmul.f32 0.125, %v353_v52  ;;  %v3858_v49 = vmul.f32 -1e+09, %v672_v39 }
  0x79   : > { %3149 = vmatprep.subr.msk.bf16.mxu1 %vm701_vm0, %v549_v61  ;;  %2977 = vmatprep.mubr.msk.bf16.mxu1 %vm701_vm0, %v449_v62  ;;  %v418_v61 = vmul.f32 0.125, %v354_v53  ;;  %v444_v62 = vpack.c.bf16 %v400_v55, %v399_v54  ;;  %v659_v53 = vunpack.c.2.s8 %v650_v41  ;;  %v660_v55 = vunpack.c.3.s8 %v650_v41 }
  0x7a   : > { %2945 = vmatprep.mubr.msk.bf16.mxu0 %vm701_vm0, %v441_v63  ;;  %v452_v63 = vpack.c.bf16 %v416_v57, %v415_v56  ;;  %v445_v1 = vpack.c.bf16 %v402_v59, %v401_v58  ;;  %v670_v57 = vcvt.s32.f32 %v654_v46 }
  0x7b   : > { %v675_v59 = vcvt.s32.f32 %v659_v53 }
  0x7f   : > { %2938 = vmatpush3.bf16.xpose.msra.mxu0 %v1029_v4  ;;  %v453_v4 = vpack.c.bf16 %v418_v61, %v417_v60  ;;  %v676_v60 = vcvt.s32.f32 %v660_v55 }
  0x80   : > { %2970 = vmatpush3.bf16.xpose.msra.mxu1 %v1174_v6  ;;  %3142 = vmatprep.subr.msk.bf16.mxu0 %vm701_vm0, %v542_v5  ;;  %v356_v5 = vld [vmem:[%s3632_s12 + $0x1d8] sm:$0xff]  ;;  %v341_v6 = vld [vmem:[%s3632_s12 + $0x160] sm:$0xff] }
  0x81   : > { %3150 = vmatprep.subr.msk.bf16.mxu1 %vm701_vm0, %v550_v7  ;;  %v342_v7 = vld [vmem:[%s3632_s12 + $0x168] sm:$0xff]  ;;  %v3882_v8 = vmul.f32 -1e+09, %v676_v60  ;;  %v652_v60 = vld [vmem:[%s3844_s16 + $0x18] sm:$0xff] }
  0x87   : > { %2940 = vmatpush3.bf16.xpose.msra.mxu0 %v1032_v12  ;;  %v419_v12 = vmul.f32 0.125, %v355_v0 }
  0x88   : > { %2972 = vmatpush3.bf16.xpose.msra.mxu1 %v1177_v14  ;;  %3143 = vmatprep.subr.msk.bf16.mxu0 %vm701_vm0, %v543_v13  ;;  %v420_v13 = vmul.f32 0.125, %v356_v5  ;;  %v405_v14 = vmul.f32 0.125, %v341_v6  ;;  %v3879_v5 = vmul.f32 -1e+09, %v675_v59 }
  0x89   : > { %3151 = vmatprep.subr.msk.bf16.mxu1 %vm701_vm0, %v551_v15  ;;  %v406_v15 = vmul.f32 0.125, %v342_v7 }
  0x8a   : > { %v454_v19 = vpack.c.bf16 %v420_v13, %v419_v12  ;;  %v658_v13 = vunpack.c.1.s8 %v650_v41 }
  0x8f   : > { %2942 = vmatpush3.bf16.xpose.msra.mxu0 %v1035_v20  ;;  %v447_v20 = vpack.c.bf16 %v406_v15, %v405_v14 }
  0x90   : > { %2974 = vmatpush3.bf16.xpose.msra.mxu1 %v1180_v22  ;;  %3144 = vmatprep.subr.msk.bf16.mxu0 %vm701_vm0, %v544_v21  ;;  %v343_v21 = vld [vmem:[%s3632_s12 + $0x170] sm:$0xff]  ;;  %v344_v22 = vld [vmem:[%s3632_s12 + $0x178] sm:$0xff] }
  0x91   : > { %3152 = vmatprep.subr.msk.bf16.mxu1 %vm701_vm0, %v552_v23  ;;  %v455_v23 = vpack.c.bf16 %v422_v17, %v421_v16  ;;  %v407_v26 = vmul.f32 0.125, %v343_v21  ;;  %v651_v16 = vld [vmem:[%s3844_s16 + $0x10] sm:$0xff]  ;;  %v674_v21 = vcvt.s32.f32 %v658_v13  ;;  %s3455_s16 = sshll.u32 %s3516_s15, 4  ;;  %s3456_s16 = int_to_ptr.vmem [resolvable:$false] %s3455_s16 }
  0x92   : > { %v663_v25 = vunpack.c.2.s8 %v651_v16  ;;  %v661_v53 = vunpack.c.0.s8 %v651_v16  ;;  %v662_v55 = vunpack.c.1.s8 %v651_v16  ;;  %s3457_s17 = scalar_lea.vmem %s3456_s16, 16384  ;;  %p3458_p0 = scmp.lt.s32.totalorder %s4711_s10, %s3456_s16 }
  0x93   : > { %v3909_v32 = vmul.f32 -1e+09, %v674_v21  ;;  %p3459_p1 = scmp.lt.s32.totalorder %s3457_s17, %s3451_s22 }
  0x94   : > { %v679_v33 = vcvt.s32.f32 %v663_v25 }
  0x95   : > { %p3460_p2 = por %p3459_p1, %p3458_p0 }
  0x97   : > { %2944 = vmatpush3.bf16.xpose.msra.mxu0 %v1038_v27  ;;  %v408_v27 = vmul.f32 0.125, %v344_v22  ;;  %p3461_p3 = pnand %p3460_p2, %p3454_p13 }
  0x98   : > { %2976 = vmatpush3.bf16.xpose.msra.mxu1 %v1183_v31  ;;  %v456_v31 = vpack.c.bf16 %v424_v29, %v423_v28  ;;  %v664_v29 = vunpack.c.3.s8 %v651_v16 }
  0x99   : > { %v448_v30 = vpack.c.bf16 %v408_v27, %v407_v26 }
  0x9a   : > { %v680_v34 = vcvt.s32.f32 %v664_v29 }
  0x9e   : > { %2946 = vmatmul.mubr.msk.bf16.vlgmr.msra.gmra.mrb[16].mxu0 %vm701_vm0, %v442_v42 }
  0x9f   : > { %2978 = vmatmul.mubr.msk.bf16.vlgmr.msra.gmra.mrb[16].mxu1 %vm701_vm0, %v450_v43  ;;  %2949 = vmatprep.mubr.msk.bf16.mxu0 %vm701_vm0, %v443_v45 }
  0xa0   : > { %2981 = vmatprep.mubr.msk.bf16.mxu1 %vm701_vm0, %v451_v48 }
  0xa6   : > { %2950 = vmatmul.mubr.msk.bf16.gmra.mrb[20].mxu0 %vm701_vm0, %v444_v62 }
  0xa7   : > { %2982 = vmatmul.mubr.msk.bf16.gmra.mrb[20].mxu1 %vm701_vm0, %v452_v63  ;;  %2953 = vmatprep.mubr.msk.bf16.mxu0 %vm701_vm0, %v445_v1  ;;  %v3873_v63 = vmul.f32 -1e+09, %v670_v57 }
  0xa8   : > { %2985 = vmatprep.mubr.msk.bf16.mxu1 %vm701_vm0, %v453_v4 }
  0xae   : > { %2954 = vmatmul.mubr.msk.bf16.gmra.mrb[24].mxu0 %vm701_vm0, %v446_v18  ;;  %v673_v18 = vcvt.s32.f32 %v657_v11 }
  0xaf   : > { %2986 = vmatmul.mubr.msk.bf16.gmra.mrb[24].mxu1 %vm701_vm0, %v454_v19  ;;  %2957 = vmatprep.mubr.msk.bf16.mxu0 %vm701_vm0, %v447_v20 }
  0xb0   : > { %2989 = vmatprep.mubr.msk.bf16.mxu1 %vm701_vm0, %v455_v23 }
  0xb6   : > { %2958 = vmatmul.mubr.msk.bf16.gmra.mrb[28].mxu0 %vm701_vm0, %v448_v30 }
  0xb7   : > { %2990 = vmatmul.mubr.msk.bf16.gmra.mrb[28].mxu1 %vm701_vm0, %v456_v31  ;;  %v3907_v31 = vmul.f32 -1e+09, %v673_v18 }
 0x131   : > { %v2883_v40 = vpop.f32.mrb[0].mxu0 }
 0x132   : > { %v3851_v42 = vadd.f32 %v2883_v40, %v3847_v37  ;;  %v2915_v43 = vpop.f32.mrb[0].mxu1  ;;  %v784_v45 = vpop.f32.mrb[1].mxu0 }
 0x133   : > { %v3856_v47 = vadd.f32 %v2915_v43, %v3847_v37  ;;  %v929_v48 = vpop.f32.mrb[1].mxu1  ;;  %v2884_v50 = vpop.f32.mrb[2].mxu0  ;;  %v3871_v62 = vadd.f32 %v784_v45, %v3853_v44  ;;  %v3920_v45 = vmul.f32 -1e+09, %v679_v33 }
 0x134   : > { %v2916_v51 = vpop.f32.mrb[2].mxu1  ;;  %1286 = vmax.xlane.f32.xlu0 %v3851_v42  ;;  %v787_v52 = vpop.f32.mrb[3].mxu0  ;;  %v3863_v56 = vadd.f32 %v929_v48, %v3853_v44  ;;  %v3876_v2 = vadd.f32 %v2884_v50, %v3858_v49  ;;  %v3923_v50 = vmul.f32 -1e+09, %v680_v34 }
 0x135   : > { %1318 = vmax.xlane.f32.xlu1 %v3856_v47  ;;  %v932_v54 = vpop.f32.mrb[3].mxu1  ;;  %v3866_v58 = vadd.f32 %v2916_v51, %v3858_v49  ;;  %v3888_v12 = vadd.f32 %v787_v52, %v3873_v63 }
 0x136   : > { %v3885_v10 = vadd.f32 %v932_v54, %v3873_v63 }
 0x138   : > { %1314 = vmax.xlane.f32.xlu0 %v3863_v56 }
 0x139   : > { %1320 = vmax.xlane.f32.xlu1 %v3866_v58  ;;  %v2887_v61 = vpop.f32.mrb[4].mxu0 }
 0x13a   : > { %v2919_v0 = vpop.f32.mrb[4].mxu1  ;;  %v800_v1 = vpop.f32.mrb[5].mxu0  ;;  %v3900_v24 = vadd.f32 %v2887_v61, %v3879_v5  ;;  %v677_v61 = vcvt.s32.f32 %v661_v53 }
 0x13b   : > { %v945_v3 = vpop.f32.mrb[5].mxu1  ;;  %v2888_v4 = vpop.f32.mrb[6].mxu0  ;;  %v3891_v14 = vadd.f32 %v2919_v0, %v3879_v5  ;;  %v3926_v52 = vadd.f32 %v800_v1, %v3907_v31  ;;  %v678_v0 = vcvt.s32.f32 %v662_v55 }
 0x13c   : > { %1282 = vmax.xlane.f32.xlu0 %v3871_v62  ;;  %v2920_v6 = vpop.f32.mrb[6].mxu1  ;;  %v803_v7 = vpop.f32.mrb[7].mxu0  ;;  %4871 = vst [vmem:[#allocation5_spill] sm:$0xff] %v3900_v24  ;;  %v3904_v28 = vadd.f32 %v2888_v4, %v3882_v8  ;;  %v3914_v36 = vadd.f32 %v945_v3, %v3907_v31  ;;  %v667_v3 = vunpack.c.2.s8 %v652_v60 }
 0x13d   : > { %1288 = vmax.xlane.f32.xlu1 %v3876_v2  ;;  %v948_v9 = vpop.f32.mrb[7].mxu1  ;;  %v3895_v15 = vadd.f32 %v2920_v6, %v3882_v8  ;;  %v3929_v54 = vadd.f32 %v803_v7, %v3909_v32  ;;  %v668_v6 = vunpack.c.3.s8 %v652_v60  ;;  %v3948_v7 = vmul.f32 -1e+09, %v677_v61 }
 0x13e   : > { %4872 = vst [vmem:[#allocation6_spill] sm:$0xff] %v3904_v28  ;;  %v3917_v40 = vadd.f32 %v948_v9, %v3909_v32  ;;  %v3950_v9 = vmul.f32 -1e+09, %v678_v0  ;;  %v683_v11 = vcvt.s32.f32 %v667_v3 }
 0x13f   : > { %4873 = vst [vmem:[#allocation7_spill] sm:$0xff] %v3929_v54  ;;  %v684_v13 = vcvt.s32.f32 %v668_v6 }
 0x140   : > { %1316 = vmax.xlane.f32.xlu0 %v3885_v10  ;;  %v3961_v18 = vmul.f32 -1e+09, %v683_v11 }
 0x141   : > { %1284 = vmax.xlane.f32.xlu1 %v3888_v12  ;;  %v2891_v17 = vpop.f32.mrb[8].mxu0 }
 0x142   : > { %v2923_v19 = vpop.f32.mrb[8].mxu1  ;;  %v816_v20 = vpop.f32.mrb[9].mxu0  ;;  %v3941_v1 = vadd.f32 %v2891_v17, %v3920_v45 }
 0x143   : > { %v961_v22 = vpop.f32.mrb[9].mxu1  ;;  %v2892_v23 = vpop.f32.mrb[10].mxu0  ;;  %v3932_v57 = vadd.f32 %v2923_v19, %v3920_v45  ;;  %v3964_v19 = vmul.f32 -1e+09, %v684_v13  ;;  %v3967_v21 = vadd.f32 %v816_v20, %v3948_v7 }
 0x144   : > { %1326 = vmax.xlane.f32.xlu0 %v3891_v14  ;;  %v2924_v26 = vpop.f32.mrb[10].mxu1  ;;  %v819_v27 = vpop.f32.mrb[11].mxu0  ;;  %4874 = vst [vmem:[#allocation8_spill] sm:$0xff] %v3941_v1  ;;  %v3945_v4 = vadd.f32 %v2892_v23, %v3923_v50  ;;  %v3955_v16 = vadd.f32 %v961_v22, %v3948_v7  ;;  %v665_v23 = vunpack.c.0.s8 %v652_v60  ;;  %v666_v22 = vunpack.c.1.s8 %v652_v60 }
 0x145   : > { %1328 = vmax.xlane.f32.xlu1 %v3895_v15  ;;  %v964_v30 = vpop.f32.mrb[11].mxu1  ;;  %v3936_v59 = vadd.f32 %v2924_v26, %v3923_v50  ;;  %4876 = vst [vmem:[#allocation10_spill] sm:$0xff] %v3967_v21  ;;  %v3970_v25 = vadd.f32 %v819_v27, %v3950_v9 }
 0x146   : > { %4875 = vst [vmem:[#allocation9_spill] sm:$0xff] %v3945_v4  ;;  %v3958_v17 = vadd.f32 %v964_v30, %v3950_v9  ;;  %v681_v30 = vcvt.s32.f32 %v665_v23  ;;  %v682_v33 = vcvt.s32.f32 %v666_v22 }
 0x147   : > { %4877 = vst [vmem:[#allocation11_spill] sm:$0xff] %v3970_v25 }
 0x148   : > { %1294 = vmax.xlane.f32.xlu0 %v3900_v24  ;;  %v3988_v34 = vmul.f32 -1e+09, %v681_v30 }
 0x149   : > { %1296 = vmax.xlane.f32.xlu1 %v3904_v28  ;;  %v2895_v35 = vpop.f32.mrb[12].mxu0 }
 0x14a   : > { %v2927_v38 = vpop.f32.mrb[12].mxu1  ;;  %v832_v39 = vpop.f32.mrb[13].mxu0  ;;  %v3981_v20 = vadd.f32 %v2895_v35, %v3961_v18 }
 0x14b   : > { %v977_v41 = vpop.f32.mrb[13].mxu1  ;;  %v2896_v43 = vpop.f32.mrb[14].mxu0  ;;  %v3973_v26 = vadd.f32 %v2927_v38, %v3961_v18  ;;  %v3990_v38 = vmul.f32 -1e+09, %v682_v33 }
 0x14c   : > { %1322 = vmax.xlane.f32.xlu0 %v3914_v36  ;;  %v2928_v46 = vpop.f32.mrb[14].mxu1  ;;  %v835_v48 = vpop.f32.mrb[15].mxu0  ;;  %4878 = vst [vmem:[#allocation12_spill] sm:$0xff] %v3981_v20  ;;  %v3985_v27 = vadd.f32 %v2896_v43, %v3964_v19  ;;  %v4003_v43 = vadd.f32 %v832_v39, %v3988_v34 }
 0x14d   : > { %1324 = vmax.xlane.f32.xlu1 %v3917_v40  ;;  %v980_v51 = vpop.f32.mrb[15].mxu1  ;;  %v3977_v29 = vadd.f32 %v2928_v46, %v3964_v19  ;;  %v3995_v46 = vadd.f32 %v977_v41, %v3988_v34  ;;  %v4006_v53 = vadd.f32 %v835_v48, %v3990_v38 }
 0x14e   : > { %4879 = vst [vmem:[#allocation13_spill] sm:$0xff] %v3985_v27  ;;  %v3998_v35 = vadd.f32 %v980_v51, %v3990_v38  ;;  %4880 = vst [vmem:[#allocation14_spill] sm:$0xff] %v4003_v43 }
 0x14f   : > { %4881 = vst [vmem:[#allocation15_spill] sm:$0xff] %v4006_v53 }
 0x150   : > { %1290 = vmax.xlane.f32.xlu0 %v3926_v52 }
 0x151   : > { %1292 = vmax.xlane.f32.xlu1 %v3929_v54 }
 0x154   : > { %1334 = vmax.xlane.f32.xlu0 %v3932_v57 }
 0x155   : > { %1336 = vmax.xlane.f32.xlu1 %v3936_v59 }
 0x158   : > { %1302 = vmax.xlane.f32.xlu0 %v3941_v1 }
 0x159   : > { %1304 = vmax.xlane.f32.xlu1 %v3945_v4 }
 0x15c   : > { %1330 = vmax.xlane.f32.xlu0 %v3955_v16 }
 0x15d   : > { %1332 = vmax.xlane.f32.xlu1 %v3958_v17 }
 0x160   : > { %1298 = vmax.xlane.f32.xlu0 %v3967_v21 }
 0x161   : > { %1300 = vmax.xlane.f32.xlu1 %v3970_v25 }
 0x164   : > { %1342 = vmax.xlane.f32.xlu0 %v3973_v26 }
 0x165   : > { %1344 = vmax.xlane.f32.xlu1 %v3977_v29 }
 0x168   : > { %1310 = vmax.xlane.f32.xlu0 %v3981_v20 }
 0x169   : > { %1312 = vmax.xlane.f32.xlu1 %v3985_v27 }
 0x16c   : > { %1338 = vmax.xlane.f32.xlu0 %v3995_v46 }
 0x16d   : > { %1340 = vmax.xlane.f32.xlu1 %v3998_v35 }
 0x170   : > { %1306 = vmax.xlane.f32.xlu0 %v4003_v43 }
 0x171   : > { %1308 = vmax.xlane.f32.xlu1 %v4006_v53  ;;  %v2947_v55 = vpop.f32.mrb[16].mxu0 }
 0x172   : > { %v2979_v41 = vpop.f32.mrb[16].mxu1  ;;  %v1074_v60 = vpop.f32.mrb[17].mxu0  ;;  %v4014_v39 = vadd.f32 %v2947_v55, %v3847_v37 }
 0x173   : > { %v4011_v51 = vadd.f32 %v2979_v41, %v3847_v37  ;;  %v1219_v61 = vpop.f32.mrb[17].mxu1  ;;  %v2948_v0 = vpop.f32.mrb[18].mxu0 }
 0x174   : > { %v2980_v3 = vpop.f32.mrb[18].mxu1  ;;  %v1077_v6 = vpop.f32.mrb[19].mxu0  ;;  %4882 = vst [vmem:[#allocation16_spill] sm:$0xff] %v4014_v39  ;;  %v4022_v13 = vadd.f32 %v2948_v0, %v3858_v49  ;;  %v4026_v33 = vadd.f32 %v1219_v61, %v3853_v44  ;;  %v4034_v0 = vadd.f32 %v1074_v60, %v3853_v44 }
 0x175   : > { %v4017_v48 = vadd.f32 %v2980_v3, %v3858_v49  ;;  %v1222_v11 = vpop.f32.mrb[19].mxu1  ;;  %1382 = vmax.xlane.f32.xlu0 %v4011_v51  ;;  %v4038_v61 = vadd.f32 %v1077_v6, %v3873_v63 }
 0x176   : > { %4883 = vst [vmem:[#allocation17_spill] sm:$0xff] %v4022_v13  ;;  %v4030_v27 = vadd.f32 %v1222_v11, %v3873_v63  ;;  %4884 = vst [vmem:[#allocation18_spill] sm:$0xff] %v4034_v0 }
 0x177   : > { %1384 = vmax.xlane.f32.xlu1 %v4017_v48  ;;  %4885 = vst [vmem:[#allocation19_spill] sm:$0xff] %v4038_v61 }
 0x179   : > { %1350 = vmax.xlane.f32.xlu0 %v4014_v39  ;;  %v2951_v23 = vpop.f32.mrb[20].mxu0 }
 0x17a   : > { %v2983_v22 = vpop.f32.mrb[20].mxu1  ;;  %v1090_v30 = vpop.f32.mrb[21].mxu0 }
 0x17b   : > { %1352 = vmax.xlane.f32.xlu1 %v4022_v13  ;;  %v1235_v37 = vpop.f32.mrb[21].mxu1  ;;  %v2952_v55 = vpop.f32.mrb[22].mxu0  ;;  %v4041_v13 = vadd.f32 %v2983_v22, %v3879_v5 }
 0x17c   : > { %v2984_v41 = vpop.f32.mrb[22].mxu1  ;;  %v1093_v3 = vpop.f32.mrb[23].mxu0  ;;  %v4050_v6 = vadd.f32 %v1235_v37, %v3907_v31 }
 0x17d   : > { %1378 = vmax.xlane.f32.xlu0 %v4026_v33  ;;  %v1238_v49 = vpop.f32.mrb[23].mxu1  ;;  %v4046_v60 = vadd.f32 %v2984_v41, %v3882_v8  ;;  %v4062_v24 = vadd.f32 %v1093_v3, %v3909_v32 }
 0x17e   : > { %v4054_v22 = vadd.f32 %v1238_v49, %v3909_v32 }
 0x17f   : > { %1380 = vmax.xlane.f32.xlu1 %v4030_v27 }
 0x181   : > { %1346 = vmax.xlane.f32.xlu0 %v4034_v0  ;;  %v2955_v39 = vpop.f32.mrb[24].mxu0 }
 0x182   : > { %v2987_v20 = vpop.f32.mrb[24].mxu1  ;;  %v1106_v11 = vpop.f32.mrb[25].mxu0 }
 0x183   : > { %1348 = vmax.xlane.f32.xlu1 %v4038_v61  ;;  %v1251_v53 = vpop.f32.mrb[25].mxu1  ;;  %v2956_v43 = vpop.f32.mrb[26].mxu0  ;;  %v4057_v61 = vadd.f32 %v1090_v30, %v3907_v31  ;;  %v4065_v49 = vadd.f32 %v2987_v20, %v3920_v45 }
 0x184   : > { %v2988_v4 = vpop.f32.mrb[26].mxu1  ;;  %v1109_v44 = vpop.f32.mrb[27].mxu0  ;;  %v4074_v54 = vadd.f32 %v1251_v53, %v3948_v7 }
 0x185   : > { %1390 = vmax.xlane.f32.xlu0 %v4041_v13  ;;  %v1254_v63 = vpop.f32.mrb[27].mxu1  ;;  %v4070_v30 = vadd.f32 %v2988_v4, %v3923_v50 }
 0x186   : > { %v4078_v32 = vadd.f32 %v1254_v63, %v3950_v9  ;;  %v4110_v63 = vadd.f32 %v1109_v44, %v3950_v9 }
 0x187   : > { %1392 = vmax.xlane.f32.xlu1 %v4046_v60 }
 0x189   : > { %1386 = vmax.xlane.f32.xlu0 %v4050_v6  ;;  %v2959_v0 = vpop.f32.mrb[28].mxu0 }
 0x18a   : > { %v2991_v1 = vpop.f32.mrb[28].mxu1  ;;  %v1122_v41 = vpop.f32.mrb[29].mxu0 }
 0x18b   : > { %1388 = vmax.xlane.f32.xlu1 %v4054_v22  ;;  %v1267_v25 = vpop.f32.mrb[29].mxu1  ;;  %v2960_v21 = vpop.f32.mrb[30].mxu0  ;;  %v4081_v20 = vadd.f32 %v2991_v1, %v3961_v18  ;;  %v4098_v1 = vadd.f32 %v2951_v23, %v3879_v5  ;;  %v4117_v5 = vadd.f32 %v2956_v43, %v3923_v50 }
 0x18c   : > { %v2992_v28 = vpop.f32.mrb[30].mxu1  ;;  %v1125_v37 = vpop.f32.mrb[31].mxu0  ;;  %v4090_v53 = vadd.f32 %v1267_v25, %v3988_v34  ;;  %v4106_v25 = vadd.f32 %v1106_v11, %v3948_v7  ;;  %v4126_v7 = vadd.f32 %v2960_v21, %v3964_v19 }
 0x18d   : > { %1354 = vmax.xlane.f32.xlu0 %v4057_v61  ;;  %v1270_v31 = vpop.f32.mrb[31].mxu1  ;;  %v4086_v4 = vadd.f32 %v2992_v28, %v3964_v19  ;;  %v4102_v28 = vadd.f32 %v2952_v55, %v3882_v8  ;;  %v4122_v8 = vadd.f32 %v1122_v41, %v3988_v34  ;;  %v4134_v50 = vadd.f32 %v1125_v37, %v3990_v38 }
 0x18e   : > { %v4094_v3 = vadd.f32 %v1270_v31, %v3990_v38  ;;  %v4113_v31 = vadd.f32 %v2955_v39, %v3920_v45  ;;  %v4129_v45 = vadd.f32 %v2959_v0, %v3961_v18 }
 0x18f   : > { %1356 = vmax.xlane.f32.xlu1 %v4062_v24 }
 0x191   : > { %1398 = vmax.xlane.f32.xlu0 %v4065_v49 }
 0x193   : > { %1400 = vmax.xlane.f32.xlu1 %v4070_v30 }
 0x195   : > { %1394 = vmax.xlane.f32.xlu0 %v4074_v54 }
 0x197   : > { %1396 = vmax.xlane.f32.xlu1 %v4078_v32 }
 0x199   : > { %1406 = vmax.xlane.f32.xlu0 %v4081_v20 }
 0x19b   : > { %1408 = vmax.xlane.f32.xlu1 %v4086_v4 }
 0x19d   : > { %1402 = vmax.xlane.f32.xlu0 %v4090_v53 }
 0x19f   : > { %1404 = vmax.xlane.f32.xlu1 %v4094_v3 }
 0x1a1   : > { %1358 = vmax.xlane.f32.xlu0 %v4098_v1 }
 0x1a3   : > { %1360 = vmax.xlane.f32.xlu1 %v4102_v28 }
 0x1a5   : > { %1362 = vmax.xlane.f32.xlu0 %v4106_v25 }
 0x1a7   : > { %1364 = vmax.xlane.f32.xlu1 %v4110_v63 }
 0x1a9   : > { %1366 = vmax.xlane.f32.xlu0 %v4113_v31 }
 0x1ab   : > { %1368 = vmax.xlane.f32.xlu1 %v4117_v5 }
 0x1ad   : > { %1370 = vmax.xlane.f32.xlu0 %v4122_v8 }
 0x1af   : > { %1376 = vmax.xlane.f32.xlu1 %v4126_v7 }
 0x1b1   : > { %1374 = vmax.xlane.f32.xlu0 %v4129_v45 }
 0x1b3   : > { %1372 = vmax.xlane.f32.xlu1 %v4134_v50 }
 0x1c1   : > { %v4138_v9 = vpop.xlane.xlu0 %1286 }
 0x1c2   : > { %v1319_v34 = vpop.xlane.xlu1 %1318 }
 0x1c3   : > { %v1428_v19 = vsub.f32 %v3856_v47, %v1319_v34 }
 0x1c5   : > { %v1510_v21 = vmul.f32 1.442695, %v1428_v19  ;;  %v1315_v43 = vpop.xlane.xlu0 %1314 }
 0x1c6   : > { %v1321_v18 = vpop.xlane.xlu1 %1320  ;;  %v1426_v39 = vsub.f32 %v3863_v56, %v1315_v43 }
 0x1c7   : > { %3195 = vpow2.f32 %v1510_v21  ;;  %v1429_v23 = vsub.f32 %v3866_v58, %v1321_v18 }
 0x1c8   : > { %v1506_v55 = vmul.f32 1.442695, %v1426_v39 }
 0x1c9   : > { %v1512_v38 = vmul.f32 1.442695, %v1429_v23  ;;  %v1283_v0 = vpop.xlane.xlu0 %1282 }
 0x1ca   : > { %3197 = vpow2.f32 %v1506_v55  ;;  %v4143_v11 = vpop.xlane.xlu1 %1288  ;;  %v1410_v44 = vsub.f32 %v3871_v62, %v1283_v0 }
 0x1cb   : > { %3199 = vpow2.f32 %v1512_v38 }
 0x1cc   : > { %v1474_v41 = vmul.f32 1.442695, %v1410_v44 }
 0x1cd   : > { %v1317_v37 = vpop.xlane.xlu0 %1316 }
 0x1ce   : > { %3201 = vpow2.f32 %v1474_v41  ;;  %v1285_v47 = vpop.xlane.xlu1 %1284  ;;  %v1427_v34 = vsub.f32 %v3885_v10, %v1317_v37  ;;  %v570_v41 = vld [vmem:[%s4169_s25 + $0x88] sm:$0xff] }
 0x1cf   : > { %v1411_v56 = vsub.f32 %v3888_v12, %v1285_v47 }
 0x1d0   : > { %v1508_v19 = vmul.f32 1.442695, %v1427_v34 }
 0x1d1   : > { %v4148_v21 = vpop.eup %3195  ;;  %v1476_v58 = vmul.f32 1.442695, %v1411_v56  ;;  %v1327_v43 = vpop.xlane.xlu0 %1326 }
 0x1d2   : > { %3203 = vpow2.f32 %v1508_v19  ;;  %v1329_v18 = vpop.xlane.xlu1 %1328  ;;  %1638 = vadd.xlane.f32.xlu0 %v4148_v21  ;;  %v1432_v62 = vsub.f32 %v3891_v14, %v1327_v43 }
 0x1d3   : > { %v1433_v39 = vsub.f32 %v3895_v15, %v1329_v18  ;;  %3205 = vpow2.f32 %v1476_v58  ;;  %v569_v15 = vld [vmem:[%s4169_s25 + $0x80] sm:$0xff] }
 0x1d4   : > { %v4153_v23 = vpop.eup %3197  ;;  %v1518_v55 = vmul.f32 1.442695, %v1432_v62  ;;  %v625_v34 = vpack.c.bf16 %v570_v41, %v569_v15  ;;  %v571_v62 = vld [vmem:[%s4169_s25 + $0x90] sm:$0xff] }
 0x1d5   : > { %v4155_v10 = vpop.eup %3199  ;;  %v4157_v12 = vpop.xlane.xlu0 %1294  ;;  %v1520_v38 = vmul.f32 1.442695, %v1433_v39  ;;  %v572_v39 = vld [vmem:[%s4169_s25 + $0x98] sm:$0xff] }
 0x1d6   : > { %3207 = vpow2.f32 %v1518_v55  ;;  %1640 = vadd.xlane.f32.xlu1 %v4155_v10  ;;  %v4160_v0 = vpop.xlane.xlu1 %1296  ;;  %1634 = vadd.xlane.f32.xlu0 %v4153_v23 }
 0x1d7   : > { %3209 = vpow2.f32 %v1520_v38  ;;  %3025 = vmatprep.subr.bf16.mxu1 %v625_v34 }
 0x1d8   : > { %v4163_v44 = vpop.eup %3201  ;;  %3026 = vmatpush3.bf16.msra.mxu1 %v625_v34 }
 0x1d9   : > { %v1323_v14 = vpop.xlane.xlu0 %1322 }
 0x1da   : > { %v1325_v37 = vpop.xlane.xlu1 %1324  ;;  %1602 = vadd.xlane.f32.xlu0 %v4163_v44  ;;  %v1430_v47 = vsub.f32 %v3914_v36, %v1323_v14  ;;  %v626_v36 = vpack.c.bf16 %v572_v39, %v571_v62 }
 0x1db   : > { %v1431_v56 = vsub.f32 %v3917_v40, %v1325_v37  ;;  %v573_v37 = vld [vmem:[%s4169_s25 + $0xa0] sm:$0xff] }
 0x1dc   : > { %v4176_v19 = vpop.eup %3203  ;;  %v1514_v58 = vmul.f32 1.442695, %v1430_v47  ;;  %3027 = vmatprep.subr.bf16.mxu1 %v626_v36  ;;  %v574_v47 = vld [vmem:[%s4169_s25 + $0xa8] sm:$0xff] }
 0x1dd   : > { %4886 = vst [vmem:[#allocation20_spill] sm:$0xff] %v4176_v19  ;;  %v1516_v43 = vmul.f32 1.442695, %v1431_v56  ;;  %1636 = vadd.xlane.f32.xlu1 %v4176_v19  ;;  %v4179_v18 = vpop.xlane.xlu0 %1290  ;;  %v4185_v38 = vpop.eup %3205  ;;  %3028 = vmatpush3.bf16.msra.mxu1 %v626_v36  ;;  %v627_v56 = vpack.c.bf16 %v574_v47, %v573_v37  ;;  %v576_v36 = vld [vmem:[%s4169_s25 + $0xb8] sm:$0xff] }
 0x1de   : > { %3211 = vpow2.f32 %v1514_v58  ;;  %v4183_v55 = vpop.xlane.xlu1 %1292  ;;  %4887 = vst [vmem:[#allocation21_spill] sm:$0xff] %v4185_v38  ;;  %v584_v19 = vld [vmem:[%s4169_s25 + $0xf8] sm:$0xff] }
 0x1df   : > { %3213 = vpow2.f32 %v1516_v43  ;;  %3029 = vmatprep.subr.bf16.mxu1 %v627_v56 }
 0x1e0   : > { %v4187_v40 = vpop.eup %3207 }
 0x1e1   : > { %4888 = vst [vmem:[#allocation22_spill] sm:$0xff] %v4187_v40  ;;  %1604 = vadd.xlane.f32.xlu1 %v4185_v38  ;;  %1646 = vadd.xlane.f32.xlu0 %v4187_v40  ;;  %v1335_v14 = vpop.xlane.xlu0 %1334  ;;  %v4195_v58 = vpop.eup %3209  ;;  %v580_v38 = vld [vmem:[%s4169_s25 + $0xd8] sm:$0xff] }
 0x1e2   : > { %v1337_v15 = vpop.xlane.xlu1 %1336  ;;  %v1436_v41 = vsub.f32 %v3932_v57, %v1335_v14  ;;  %4889 = vst [vmem:[#allocation23_spill] sm:$0xff] %v4195_v58  ;;  %3030 = vmatpush3.bf16.msra.mxu1 %v627_v56  ;;  %v575_v57 = vld [vmem:[%s4169_s25 + $0xb0] sm:$0xff]  ;;  %v578_v56 = vld [vmem:[%s4169_s25 + $0xc8] sm:$0xff] }
 0x1e3   : > { %v1437_v34 = vsub.f32 %v3936_v59, %v1337_v15  ;;  %v628_v59 = vpack.c.bf16 %v576_v36, %v575_v57 }
 0x1e4   : > { %v1526_v43 = vmul.f32 1.442695, %v1436_v41 }
 0x1e5   : > { %v1528_v62 = vmul.f32 1.442695, %v1437_v34  ;;  %1648 = vadd.xlane.f32.xlu1 %v4195_v58  ;;  %v4198_v39 = vpop.xlane.xlu0 %1302  ;;  %3031 = vmatprep.subr.bf16.mxu1 %v628_v59  ;;  %v577_v34 = vld [vmem:[%s4169_s25 + $0xc0] sm:$0xff] }
 0x1e6   : > { %3215 = vpow2.f32 %v1526_v43  ;;  %v4200_v40 = vpop.xlane.xlu1 %1304  ;;  %3032 = vmatpush3.bf16.msra.mxu1 %v628_v59 }
 0x1e7   : > { %3217 = vpow2.f32 %v1528_v62  ;;  %v629_v62 = vpack.c.bf16 %v578_v56, %v577_v34  ;;  %v581_v34 = vld [vmem:[%s4169_s25 + $0xe0] sm:$0xff]  ;;  %v582_v56 = vld [vmem:[%s4169_s25 + $0xe8] sm:$0xff] }
 0x1e8   : > { %v4204_v14 = vpop.eup %3211 }
 0x1e9   : > { %4890 = vst [vmem:[#allocation24_spill] sm:$0xff] %v4204_v14  ;;  %v4206_v15 = vpop.eup %3213  ;;  %1642 = vadd.xlane.f32.xlu0 %v4204_v14  ;;  %v1331_v41 = vpop.xlane.xlu0 %1330  ;;  %3033 = vmatprep.subr.bf16.mxu1 %v629_v62 }
 0x1ea   : > { %4891 = vst [vmem:[#allocation25_spill] sm:$0xff] %v4206_v15  ;;  %v1333_v37 = vpop.xlane.xlu1 %1332  ;;  %1644 = vadd.xlane.f32.xlu1 %v4206_v15  ;;  %v1434_v47 = vsub.f32 %v3955_v16, %v1331_v41  ;;  %3034 = vmatpush3.bf16.msra.mxu1 %v629_v62  ;;  %v579_v15 = vld [vmem:[%s4169_s25 + $0xd0] sm:$0xff] }
 0x1eb   : > { %v1435_v43 = vsub.f32 %v3958_v17, %v1333_v37  ;;  %v630_v16 = vpack.c.bf16 %v580_v38, %v579_v15  ;;  %v631_v15 = vpack.c.bf16 %v582_v56, %v581_v34 }
 0x1ec   : > { %v1522_v57 = vmul.f32 1.442695, %v1434_v47 }
 0x1ed   : > { %v1524_v36 = vmul.f32 1.442695, %v1435_v43  ;;  %v4214_v58 = vpop.xlane.xlu0 %1298  ;;  %3035 = vmatprep.subr.bf16.mxu1 %v630_v16 }
 0x1ee   : > { %3219 = vpow2.f32 %v1522_v57  ;;  %v4216_v14 = vpop.xlane.xlu1 %1300  ;;  %3036 = vmatpush3.bf16.msra.mxu1 %v630_v16 }
 0x1ef   : > { %3221 = vpow2.f32 %v1524_v36  ;;  %3037 = vmatprep.subr.bf16.mxu1 %v631_v15 }
 0x1f0   : > { %v4220_v59 = vpop.eup %3215 }
 0x1f1   : > { %4892 = vst [vmem:[#allocation26_spill] sm:$0xff] %v4220_v59  ;;  %v4222_v41 = vpop.eup %3217  ;;  %1654 = vadd.xlane.f32.xlu0 %v4220_v59  ;;  %v1343_v17 = vpop.xlane.xlu0 %1342  ;;  %v583_v59 = vld [vmem:[%s4169_s25 + $0xf0] sm:$0xff] }
 0x1f2   : > { %4893 = vst [vmem:[#allocation27_spill] sm:$0xff] %v4222_v41  ;;  %v1345_v37 = vpop.xlane.xlu1 %1344  ;;  %1656 = vadd.xlane.f32.xlu1 %v4222_v41  ;;  %v1440_v47 = vsub.f32 %v3973_v26, %v1343_v17  ;;  %3038 = vmatpush3.bf16.msra.mxu1 %v631_v15  ;;  %v632_v41 = vpack.c.bf16 %v584_v19, %v583_v59 }
 0x1f3   : > { %v1441_v38 = vsub.f32 %v3977_v29, %v1345_v37 }
 0x1f4   : > { %v1534_v43 = vmul.f32 1.442695, %v1440_v47  ;;  %3039 = vmatprep.subr.bf16.mxu1 %v632_v41 }
 0x1f5   : > { %v1536_v62 = vmul.f32 1.442695, %v1441_v38  ;;  %v4230_v57 = vpop.xlane.xlu0 %1310 }
 0x1f6   : > { %3223 = vpow2.f32 %v1534_v43  ;;  %v4232_v36 = vpop.xlane.xlu1 %1312  ;;  %3040 = vmatpush3.bf16.msra.mxu1 %v632_v41 }
 0x1f7   : > { %3225 = vpow2.f32 %v1536_v62 }
 0x1f8   : > { %v4236_v26 = vpop.eup %3219 }
 0x1f9   : > { %v4238_v16 = vpop.eup %3221  ;;  %1650 = vadd.xlane.f32.xlu0 %v4236_v26  ;;  %v1339_v29 = vpop.xlane.xlu0 %1338 }
 0x1fa   : > { %4894 = vst [vmem:[#allocation28_spill] sm:$0xff] %v4238_v16  ;;  %v1341_v17 = vpop.xlane.xlu1 %1340  ;;  %1652 = vadd.xlane.f32.xlu1 %v4238_v16  ;;  %v1438_v37 = vsub.f32 %v3995_v46, %v1339_v29 }
 0x1fb   : > { %v1439_v47 = vsub.f32 %v3998_v35, %v1341_v17 }
 0x1fc   : > { %v1530_v34 = vmul.f32 1.442695, %v1438_v37 }
 0x1fd   : > { %v1532_v56 = vmul.f32 1.442695, %v1439_v47  ;;  %v4244_v38 = vpop.xlane.xlu0 %1306 }
 0x1fe   : > { %3227 = vpow2.f32 %v1530_v34  ;;  %v4248_v59 = vpop.xlane.xlu1 %1308 }
 0x1ff   : > { %3229 = vpow2.f32 %v1532_v56 }
 0x200   : > { %v4246_v19 = vpop.eup %3223 }
 0x201   : > { %4895 = vst [vmem:[#allocation29_spill] sm:$0xff] %v4246_v19  ;;  %v4250_v15 = vpop.eup %3225  ;;  %1662 = vadd.xlane.f32.xlu0 %v4246_v19  ;;  %v602_v19 = vld [vmem:[%s4169_s25 + $0x188] sm:$0xff] }
 0x202   : > { %4896 = vst [vmem:[#allocation30_spill] sm:$0xff] %v4250_v15  ;;  %1664 = vadd.xlane.f32.xlu1 %v4250_v15  ;;  %v1383_v46 = vpop.xlane.xlu0 %1382 }
 0x203   : > { %v1460_v41 = vsub.f32 %v4011_v51, %v1383_v46 }
 0x204   : > { %v1385_v35 = vpop.xlane.xlu1 %1384 }
 0x205   : > { %v1574_v43 = vmul.f32 1.442695, %v1460_v41  ;;  %v1461_v62 = vsub.f32 %v4017_v48, %v1385_v35 }
 0x206   : > { %v4256_v29 = vpop.xlane.xlu0 %1350 }
 0x207   : > { %3231 = vpow2.f32 %v1574_v43  ;;  %v1576_v17 = vmul.f32 1.442695, %v1461_v62 }
 0x208   : > { %v4258_v37 = vpop.eup %3227  ;;  %v4260_v47 = vpop.xlane.xlu1 %1352 }
 0x209   : > { %4897 = vst [vmem:[#allocation31_spill] sm:$0xff] %v4258_v37  ;;  %v4262_v34 = vpop.eup %3229  ;;  %3233 = vpow2.f32 %v1576_v17  ;;  %1658 = vadd.xlane.f32.xlu0 %v4258_v37 }
 0x20a   : > { %4898 = vst [vmem:[#allocation32_spill] sm:$0xff] %v4262_v34  ;;  %1660 = vadd.xlane.f32.xlu1 %v4262_v34  ;;  %v1379_v51 = vpop.xlane.xlu0 %1378 }
 0x20b   : > { %v1458_v56 = vsub.f32 %v4026_v33, %v1379_v51 }
 0x20c   : > { %v1381_v46 = vpop.xlane.xlu1 %1380 }
 0x20d   : > { %v1570_v48 = vmul.f32 1.442695, %v1458_v56  ;;  %v1459_v41 = vsub.f32 %v4030_v27, %v1381_v46 }
 0x20e   : > { %v4268_v35 = vpop.xlane.xlu0 %1346 }
 0x20f   : > { %3235 = vpow2.f32 %v1570_v48  ;;  %v1572_v43 = vmul.f32 1.442695, %v1459_v41 }
 0x210   : > { %v4270_v62 = vpop.xlane.xlu1 %1348 }
 0x211   : > { %v4272_v15 = vpop.eup %3231  ;;  %3237 = vpow2.f32 %v1572_v43  ;;  %v601_v43 = vld [vmem:[%s4169_s25 + $0x180] sm:$0xff] }
 0x212   : > { %4899 = vst [vmem:[#allocation33_spill] sm:$0xff] %v4272_v15  ;;  %1702 = vadd.xlane.f32.xlu0 %v4272_v15  ;;  %v1391_v17 = vpop.xlane.xlu0 %1390 }
 0x213   : > { %v4275_v34 = vpop.eup %3233  ;;  %v1464_v33 = vsub.f32 %v4041_v13, %v1391_v17  ;;  %v4286_v17 = vpack.c.bf16 %v602_v19, %v601_v43 }
 0x214   : > { %v1393_v51 = vpop.xlane.xlu1 %1392  ;;  %1704 = vadd.xlane.f32.xlu1 %v4275_v34 }
 0x215   : > { %v1582_v27 = vmul.f32 1.442695, %v1464_v33  ;;  %v1465_v56 = vsub.f32 %v4046_v60, %v1393_v51  ;;  %3089 = vmatprep.subr.bf16.mxu1 %v4286_v17 }
 0x216   : > { %v1387_v46 = vpop.xlane.xlu0 %1386 }
 0x217   : > { %3239 = vpow2.f32 %v1582_v27  ;;  %v1584_v48 = vmul.f32 1.442695, %v1465_v56  ;;  %v1462_v41 = vsub.f32 %v4050_v6, %v1387_v46 }
 0x218   : > { %v1389_v37 = vpop.xlane.xlu1 %1388 }
 0x219   : > { %v4283_v15 = vpop.eup %3235  ;;  %3241 = vpow2.f32 %v1584_v48  ;;  %v1578_v16 = vmul.f32 1.442695, %v1462_v41  ;;  %v1463_v13 = vsub.f32 %v4054_v22, %v1389_v37 }
 0x21a   : > { %1698 = vadd.xlane.f32.xlu0 %v4283_v15  ;;  %v4289_v33 = vpop.xlane.xlu0 %1354 }
 0x21b   : > { %v4291_v60 = vpop.eup %3237  ;;  %3243 = vpow2.f32 %v1578_v16  ;;  %v1580_v51 = vmul.f32 1.442695, %v1463_v13 }
 0x21c   : > { %v4294_v6 = vpop.xlane.xlu1 %1356  ;;  %1700 = vadd.xlane.f32.xlu1 %v4291_v60 }
 0x21d   : > { %3245 = vpow2.f32 %v1580_v51 }
 0x21e   : > { %v1399_v27 = vpop.xlane.xlu0 %1398 }
 0x21f   : > { %v1468_v22 = vsub.f32 %v4065_v49, %v1399_v27 }
 0x220   : > { %v1401_v19 = vpop.xlane.xlu1 %1400 }
 0x221   : > { %v4298_v37 = vpop.eup %3239  ;;  %v1590_v56 = vmul.f32 1.442695, %v1468_v22  ;;  %v1469_v46 = vsub.f32 %v4070_v30, %v1401_v19 }
 0x222   : > { %1710 = vadd.xlane.f32.xlu0 %v4298_v37  ;;  %v1395_v16 = vpop.xlane.xlu0 %1394 }
 0x223   : > { %v4302_v48 = vpop.eup %3241  ;;  %3247 = vpow2.f32 %v1590_v56  ;;  %v1592_v41 = vmul.f32 1.442695, %v1469_v46  ;;  %v1466_v43 = vsub.f32 %v4074_v54, %v1395_v16 }
 0x224   : > { %v1397_v13 = vpop.xlane.xlu1 %1396  ;;  %1712 = vadd.xlane.f32.xlu1 %v4302_v48 }
 0x225   : > { %v4306_v51 = vpop.eup %3243  ;;  %3249 = vpow2.f32 %v1592_v41  ;;  %v1586_v49 = vmul.f32 1.442695, %v1466_v43  ;;  %v1467_v27 = vsub.f32 %v4078_v32, %v1397_v13  ;;  %v1412_v32 = vsub.f32 %v3851_v42, %v4138_v9 }
 0x226   : > { %4900 = vst [vmem:[#allocation34_spill] sm:$0xff] %v4306_v51  ;;  %1706 = vadd.xlane.f32.xlu0 %v4306_v51  ;;  %v1407_v30 = vpop.xlane.xlu0 %1406  ;;  %v1414_v42 = vsub.f32 %v3926_v52, %v4179_v18 }
 0x227   : > { %v4310_v22 = vpop.eup %3245  ;;  %3251 = vpow2.f32 %v1586_v49  ;;  %v1588_v19 = vmul.f32 1.442695, %v1467_v27  ;;  %v1472_v56 = vsub.f32 %v4081_v20, %v1407_v30  ;;  %v1413_v20 = vsub.f32 %v3876_v2, %v4143_v11  ;;  %v4901_v2 = vld [vmem:[#allocation7_spill] sm:$0xff] }
 0x228   : > { %v1409_v46 = vpop.xlane.xlu1 %1408  ;;  %1708 = vadd.xlane.f32.xlu1 %v4310_v22  ;;  %v1415_v11 = vsub.f32 %v4901_v2, %v4183_v55  ;;  %v1482_v52 = vmul.f32 1.442695, %v1414_v42 }
 0x229   : > { %3253 = vpow2.f32 %v1588_v19  ;;  %v1598_v54 = vmul.f32 1.442695, %v1472_v56  ;;  %v1473_v16 = vsub.f32 %v4086_v4, %v1409_v46  ;;  %v1478_v19 = vmul.f32 1.442695, %v1412_v32 }
 0x22a   : > { %v1403_v41 = vpop.xlane.xlu0 %1402  ;;  %v1480_v56 = vmul.f32 1.442695, %v1413_v20 }
 0x22b   : > { %3255 = vpow2.f32 %v1598_v54  ;;  %v1600_v43 = vmul.f32 1.442695, %v1473_v16  ;;  %v1470_v13 = vsub.f32 %v4090_v53, %v1403_v41  ;;  %v4903_v54 = vld [vmem:[#allocation6_spill] sm:$0xff]  ;;  %v1484_v41 = vmul.f32 1.442695, %v1415_v11 }
 0x22c   : > { %v1405_v51 = vpop.xlane.xlu1 %1404  ;;  %v1417_v16 = vsub.f32 %v4903_v54, %v4160_v0  ;;  %v4905_v0 = vld [vmem:[#allocation11_spill] sm:$0xff]  ;;  %v4908_v54 = vld [vmem:[#allocation14_spill] sm:$0xff] }
 0x22d   : > { %v4318_v49 = vpop.eup %3247  ;;  %3257 = vpow2.f32 %v1600_v43  ;;  %v1594_v27 = vmul.f32 1.442695, %v1470_v13  ;;  %v1471_v30 = vsub.f32 %v4094_v3, %v1405_v51  ;;  %v4902_v51 = vld [vmem:[#allocation5_spill] sm:$0xff] }
 0x22e   : > { %1718 = vadd.xlane.f32.xlu0 %v4318_v49  ;;  %v1416_v46 = vsub.f32 %v4902_v51, %v4157_v12  ;;  %v4904_v12 = vld [vmem:[#allocation10_spill] sm:$0xff]  ;;  %v1488_v20 = vmul.f32 1.442695, %v1417_v16  ;;  %v1422_v16 = vsub.f32 %v4908_v54, %v4244_v38  ;;  %v4910_v38 = vld [vmem:[#allocation12_spill] sm:$0xff] }
 0x22f   : > { %v4324_v4 = vpop.eup %3249  ;;  %3259 = vpow2.f32 %v1594_v27  ;;  %v1596_v53 = vmul.f32 1.442695, %v1471_v30  ;;  %v1418_v43 = vsub.f32 %v4904_v12, %v4214_v58  ;;  %v1419_v27 = vsub.f32 %v4905_v0, %v4216_v14  ;;  %v553_v58 = vld [vmem:[%s4169_s25] sm:$0xff] }
 0x230   : > { %1720 = vadd.xlane.f32.xlu1 %v4324_v4  ;;  %v1486_v32 = vmul.f32 1.442695, %v1416_v46  ;;  %v4907_v14 = vld [vmem:[#allocation9_spill] sm:$0xff] }
 0x231   : > { %v4329_v9 = vpop.eup %3251  ;;  %3261 = vpow2.f32 %v1596_v53  ;;  %v1490_v53 = vmul.f32 1.442695, %v1418_v43  ;;  %v1421_v51 = vsub.f32 %v4907_v14, %v4200_v40  ;;  %v1492_v46 = vmul.f32 1.442695, %v1419_v27  ;;  %v4911_v14 = vld [vmem:[#allocation13_spill] sm:$0xff] }
 0x232   : > { %1714 = vadd.xlane.f32.xlu0 %v4329_v9  ;;  %3263 = vpow2.f32 %v1478_v19  ;;  %v4906_v19 = vld [vmem:[#allocation8_spill] sm:$0xff] }
 0x233   : > { %v4334_v3 = vpop.eup %3253  ;;  %3265 = vpow2.f32 %v1480_v56  ;;  %v1420_v42 = vsub.f32 %v4906_v19, %v4198_v39  ;;  %v554_v56 = vld [vmem:[%s4169_s25 + $0x8] sm:$0xff]  ;;  %v1496_v43 = vmul.f32 1.442695, %v1421_v51  ;;  %v1424_v19 = vsub.f32 %v4910_v38, %v4230_v57 }
 0x234   : > { %1716 = vadd.xlane.f32.xlu1 %v4334_v3  ;;  %3267 = vpow2.f32 %v1482_v52  ;;  %v617_v2 = vpack.c.bf16 %v554_v56, %v553_v58  ;;  %v557_v58 = vld [vmem:[%s4169_s25 + $0x20] sm:$0xff]  ;;  %v558_v56 = vld [vmem:[%s4169_s25 + $0x28] sm:$0xff]  ;;  %v1425_v51 = vsub.f32 %v4911_v14, %v4232_v36 }
 0x235   : > { %v4339_v18 = vpop.eup %3255  ;;  %3269 = vpow2.f32 %v1484_v41  ;;  %v1494_v39 = vmul.f32 1.442695, %v1420_v42  ;;  %v555_v41 = vld [vmem:[%s4169_s25 + $0x10] sm:$0xff]  ;;  %v1498_v42 = vmul.f32 1.442695, %v1422_v16  ;;  %v4912_v16 = vld [vmem:[#allocation18_spill] sm:$0xff] }
 0x236   : > { %1726 = vadd.xlane.f32.xlu0 %v4339_v18  ;;  %3271 = vpow2.f32 %v1486_v32  ;;  %2993 = vmatprep.subr.bf16.mxu0 %v617_v2  ;;  %v556_v32 = vld [vmem:[%s4169_s25 + $0x18] sm:$0xff]  ;;  %v1502_v54 = vmul.f32 1.442695, %v1424_v19  ;;  %v562_v14 = vld [vmem:[%s4169_s25 + $0x48] sm:$0xff] }
 0x237   : > { %v4344_v55 = vpop.eup %3257  ;;  %3273 = vpow2.f32 %v1488_v20  ;;  %2994 = vmatpush3.bf16.msra.mxu0 %v617_v2  ;;  %v618_v12 = vpack.c.bf16 %v556_v32, %v555_v41  ;;  %v4909_v20 = vld [vmem:[#allocation15_spill] sm:$0xff]  ;;  %v1442_v41 = vsub.f32 %v4912_v16, %v4268_v35  ;;  %v4915_v16 = vld [vmem:[#allocation17_spill] sm:$0xff] }
 0x238   : > { %1728 = vadd.xlane.f32.xlu1 %v4344_v55  ;;  %3275 = vpow2.f32 %v1490_v53  ;;  %v1423_v0 = vsub.f32 %v4909_v20, %v4248_v59  ;;  %v4382_v53 = vpop.xlane.xlu0 %1358  ;;  %v619_v59 = vpack.c.bf16 %v558_v56, %v557_v58  ;;  %v559_v32 = vld [vmem:[%s4169_s25 + $0x30] sm:$0xff]  ;;  %v1504_v20 = vmul.f32 1.442695, %v1425_v51 }
 0x239   : > { %v4349_v13 = vpop.eup %3259  ;;  %3277 = vpow2.f32 %v1492_v46  ;;  %2995 = vmatprep.subr.bf16.mxu0 %v618_v12  ;;  %v1538_v56 = vmul.f32 1.442695, %v1442_v41 }
 0x23a   : > { %1722 = vadd.xlane.f32.xlu0 %v4349_v13  ;;  %3279 = vpow2.f32 %v1494_v39  ;;  %v1500_v46 = vmul.f32 1.442695, %v1423_v0  ;;  %v4391_v39 = vpop.xlane.xlu1 %1360  ;;  %v4913_v0 = vld [vmem:[#allocation19_spill] sm:$0xff] }
 0x23b   : > { %v4354_v30 = vpop.eup %3261  ;;  %2996 = vmatpush3.bf16.msra.mxu0 %v618_v12  ;;  %3281 = vpow2.f32 %v1496_v43  ;;  %v560_v12 = vld [vmem:[%s4169_s25 + $0x38] sm:$0xff]  ;;  %v1443_v38 = vsub.f32 %v4913_v0, %v4270_v62  ;;  %v563_v0 = vld [vmem:[%s4169_s25 + $0x50] sm:$0xff] }
 0x23c   : > { %1724 = vadd.xlane.f32.xlu1 %v4354_v30  ;;  %v4361_v11 = vpop.eup %3263  ;;  %2997 = vmatprep.subr.bf16.mxu0 %v619_v59  ;;  %3283 = vpow2.f32 %v1498_v42  ;;  %v620_v36 = vpack.c.bf16 %v560_v12, %v559_v32  ;;  %v4405_v19 = vpop.xlane.xlu0 %1362  ;;  %v4914_v42 = vld [vmem:[#allocation16_spill] sm:$0xff]  ;;  %v1446_v12 = vsub.f32 %v4057_v61, %v4289_v33 }
 0x23d   : > { %v4366_v52 = vpop.eup %3265  ;;  %3285 = vpow2.f32 %v1500_v46  ;;  %v1444_v58 = vsub.f32 %v4914_v42, %v4256_v29  ;;  %v1540_v32 = vmul.f32 1.442695, %v1443_v38  ;;  %v564_v42 = vld [vmem:[%s4169_s25 + $0x58] sm:$0xff] }
 0x23e   : > { %1606 = vadd.xlane.f32.xlu0 %v4361_v11  ;;  %v4373_v40 = vpop.eup %3267  ;;  %3287 = vpow2.f32 %v1502_v54  ;;  %v4414_v51 = vpop.xlane.xlu1 %1364  ;;  %v1445_v54 = vsub.f32 %v4915_v16, %v4260_v47  ;;  %v622_v47 = vpack.c.bf16 %v564_v42, %v563_v0  ;;  %v1546_v33 = vmul.f32 1.442695, %v1446_v12  ;;  %v567_v12 = vld [vmem:[%s4169_s25 + $0x70] sm:$0xff]  ;;  %v568_v0 = vld [vmem:[%s4169_s25 + $0x78] sm:$0xff] }
 0x23f   : > { %v4378_v27 = vpop.eup %3269  ;;  %2998 = vmatpush3.bf16.msra.mxu0 %v619_v59  ;;  %v561_v59 = vld [vmem:[%s4169_s25 + $0x40] sm:$0xff]  ;;  %3289 = vpow2.f32 %v1504_v20  ;;  %v1542_v41 = vmul.f32 1.442695, %v1444_v58  ;;  %v1447_v58 = vsub.f32 %v4062_v24, %v4294_v6 }
 0x240   : > { %1608 = vadd.xlane.f32.xlu1 %v4366_v52  ;;  %v4387_v2 = vpop.eup %3271  ;;  %2999 = vmatprep.subr.bf16.mxu0 %v620_v36  ;;  %v621_v62 = vpack.c.bf16 %v562_v14, %v561_v59  ;;  %3291 = vpow2.f32 %v1538_v56  ;;  %v1544_v38 = vmul.f32 1.442695, %v1445_v54  ;;  %v1448_v59 = vsub.f32 %v4098_v1, %v4382_v53  ;;  %v565_v14 = vld [vmem:[%s4169_s25 + $0x60] sm:$0xff] }
 0x241   : > { %v4394_v57 = vpop.eup %3273  ;;  %3293 = vpow2.f32 %v1540_v32  ;;  %v1548_v6 = vmul.f32 1.442695, %v1447_v58  ;;  %v1449_v54 = vsub.f32 %v4102_v28, %v4391_v39  ;;  %v624_v28 = vpack.c.bf16 %v568_v0, %v567_v12 }
 0x242   : > { %1610 = vadd.xlane.f32.xlu0 %v4373_v40  ;;  %v4401_v43 = vpop.eup %3275  ;;  %v1369_v56 = vpop.xlane.xlu1 %1368  ;;  %3295 = vpow2.f32 %v1542_v41  ;;  %v1550_v53 = vmul.f32 1.442695, %v1448_v59  ;;  %v1450_v41 = vsub.f32 %v4106_v25, %v4405_v19 }
 0x243   : > { %v4408_v35 = vpop.eup %3277  ;;  %3000 = vmatpush3.bf16.msra.mxu0 %v620_v36  ;;  %v1367_v36 = vpop.xlane.xlu0 %1366  ;;  %3297 = vpow2.f32 %v1544_v38  ;;  %v1451_v38 = vsub.f32 %v4110_v63, %v4414_v51 }
 0x244   : > { %1612 = vadd.xlane.f32.xlu1 %v4378_v27  ;;  %v4417_v46 = vpop.eup %3279  ;;  %3001 = vmatprep.subr.bf16.mxu0 %v621_v62  ;;  %3299 = vpow2.f32 %v1546_v33  ;;  %v1452_v58 = vsub.f32 %v4113_v31, %v1367_v36  ;;  %v1554_v19 = vmul.f32 1.442695, %v1450_v41  ;;  %v1453_v33 = vsub.f32 %v4117_v5, %v1369_v56 }
 0x245   : > { %v4422_v29 = vpop.eup %3281  ;;  %3301 = vpow2.f32 %v1548_v6  ;;  %v1556_v31 = vmul.f32 1.442695, %v1451_v38 }
 0x246   : > { %1614 = vadd.xlane.f32.xlu0 %v4387_v2  ;;  %v4429_v20 = vpop.eup %3283  ;;  %v1377_v42 = vpop.xlane.xlu1 %1376  ;;  %3303 = vpow2.f32 %v1550_v53  ;;  %v1558_v51 = vmul.f32 1.442695, %v1452_v58  ;;  %v1560_v5 = vmul.f32 1.442695, %v1453_v33 }
 0x247   : > { %3002 = vmatpush3.bf16.msra.mxu0 %v621_v62  ;;  %v4434_v61 = vpop.eup %3285  ;;  %v566_v62 = vld [vmem:[%s4169_s25 + $0x68] sm:$0xff]  ;;  %v1371_v32 = vpop.xlane.xlu0 %1370 }
 0x248   : > { %1616 = vadd.xlane.f32.xlu1 %v4394_v57  ;;  %3003 = vmatprep.subr.bf16.mxu0 %v622_v47  ;;  %v623_v16 = vpack.c.bf16 %v566_v62, %v565_v14  ;;  %v4441_v24 = vpop.eup %3287  ;;  %v585_v14 = vld [vmem:[%s4169_s25 + $0x100] sm:$0xff]  ;;  %v586_v62 = vld [vmem:[%s4169_s25 + $0x108] sm:$0xff]  ;;  %v1454_v56 = vsub.f32 %v4122_v8, %v1371_v32 }
 0x249   : > { %v4446_v1 = vpop.eup %3289 }
 0x24a   : > { %1618 = vadd.xlane.f32.xlu0 %v4401_v43  ;;  %v4453_v39 = vpop.eup %3291  ;;  %v1373_v36 = vpop.xlane.xlu1 %1372 }
 0x24b   : > { %3004 = vmatpush3.bf16.msra.mxu0 %v622_v47  ;;  %v1552_v47 = vmul.f32 1.442695, %v1449_v54  ;;  %v4459_v25 = vpop.eup %3293  ;;  %v1375_v59 = vpop.xlane.xlu0 %1374  ;;  %v1455_v41 = vsub.f32 %v4134_v50, %v1373_v36  ;;  %v1457_v50 = vsub.f32 %v4126_v7, %v1377_v42 }
 0x24c   : > { %1620 = vadd.xlane.f32.xlu1 %v4408_v35  ;;  %3005 = vmatprep.subr.bf16.mxu0 %v623_v16  ;;  %v4467_v63 = vpop.eup %3295  ;;  %v1456_v12 = vsub.f32 %v4129_v45, %v1375_v59 }
 0x24d   : > { %3305 = vpow2.f32 %v1552_v47  ;;  %v4471_v6 = vpop.eup %3297  ;;  %v1564_v38 = vmul.f32 1.442695, %v1455_v41  ;;  %v1568_v59 = vmul.f32 1.442695, %v1457_v50 }
 0x24e   : > { %1622 = vadd.xlane.f32.xlu0 %v4417_v46  ;;  %3307 = vpow2.f32 %v1554_v19  ;;  %v4475_v53 = vpop.eup %3299  ;;  %v1566_v45 = vmul.f32 1.442695, %v1456_v12 }
 0x24f   : > { %3006 = vmatpush3.bf16.msra.mxu0 %v623_v16  ;;  %v4465_v16 = vpack.c.bf16 %v586_v62, %v585_v14  ;;  %v4480_v0 = vpop.eup %3301 }
 0x250   : > { %1624 = vadd.xlane.f32.xlu1 %v4422_v29  ;;  %3007 = vmatprep.subr.bf16.mxu0 %v624_v28  ;;  %v4484_v47 = vpop.eup %3303 }
 0x252   : > { %1626 = vadd.xlane.f32.xlu0 %v4429_v20 }
 0x253   : > { %3008 = vmatpush3.bf16.msra.mxu0 %v624_v28  ;;  %v1562_v28 = vmul.f32 1.442695, %v1454_v56 }
 0x254   : > { %1628 = vadd.xlane.f32.xlu1 %v4434_v61  ;;  %3057 = vmatprep.subr.bf16.mxu0 %v4465_v16 }
 0x256   : > { %1630 = vadd.xlane.f32.xlu0 %v4441_v24 }
 0x257   : > { %v4488_v58 = vpop.eup %3305 }
 0x258   : > { %1632 = vadd.xlane.f32.xlu1 %v4446_v1  ;;  %v4493_v33 = vpop.eup %3307 }
 0x25a   : > { %1666 = vadd.xlane.f32.xlu0 %v4453_v39 }
 0x25c   : > { %1668 = vadd.xlane.f32.xlu1 %v4459_v25 }
 0x25e   : > { %1670 = vadd.xlane.f32.xlu0 %v4467_v63 }
 0x25f   : > { %v1639_v54 = vpop.xlane.xlu0 %1638 }
 0x260   : > { %3309 = vrcp.f32 %v1639_v54  ;;  %1672 = vadd.xlane.f32.xlu1 %v4471_v6 }
 0x261   : > { %3311 = vpow2.f32 %v1556_v31 }
 0x262   : > { %3313 = vpow2.f32 %v1558_v51  ;;  %1674 = vadd.xlane.f32.xlu0 %v4475_v53 }
 0x263   : > { %3315 = vpow2.f32 %v1560_v5  ;;  %v1641_v8 = vpop.xlane.xlu1 %1640  ;;  %v1635_v32 = vpop.xlane.xlu0 %1634 }
 0x264   : > { %3317 = vrcp.f32 %v1641_v8  ;;  %1676 = vadd.xlane.f32.xlu1 %v4480_v0 }
 0x265   : > { %3319 = vrcp.f32 %v1635_v32 }
 0x266   : > { %1678 = vadd.xlane.f32.xlu0 %v4484_v47  ;;  %3321 = vpow2.f32 %v1562_v28 }
 0x267   : > { %v1603_v19 = vpop.xlane.xlu0 %1602 }
 0x268   : > { %3323 = vrcp.f32 %v1603_v19  ;;  %1680 = vadd.xlane.f32.xlu1 %v4488_v58 }
 0x269   : > { %3325 = vpow2.f32 %v1564_v38 }
 0x26a   : > { %v3310_v14 = vpop.eup %3309  ;;  %3327 = vpow2.f32 %v1566_v45  ;;  %1682 = vadd.xlane.f32.xlu0 %v4493_v33  ;;  %v1637_v7 = vpop.xlane.xlu1 %1636  ;;  %v4918_v45 = vld [vmem:[#allocation20_spill] sm:$0xff] }
 0x26b   : > { %v4496_v42 = vpop.eup %3311  ;;  %v1812_v62 = vmul.f32 %v3310_v14, %v4148_v21  ;;  %3329 = vrcp.f32 %v1637_v7  ;;  %v604_v14 = vld [vmem:[%s4169_s25 + $0x198] sm:$0xff] }
 0x26c   : > { %v4499_v31 = vpop.eup %3313  ;;  %1684 = vadd.xlane.f32.xlu1 %v4496_v42  ;;  %3331 = vpow2.f32 %v1568_v59  ;;  %v603_v59 = vld [vmem:[%s4169_s25 + $0x190] sm:$0xff] }
 0x26d   : > { %v4502_v51 = vpop.eup %3315  ;;  %1876 = vst [vmem:[%s4504_s7 + $0x90] sm:$0xff] %v1812_v62 }
 0x26e   : > { %v3318_v36 = vpop.eup %3317  ;;  %1686 = vadd.xlane.f32.xlu0 %v4499_v31  ;;  %v1605_v5 = vpop.xlane.xlu1 %1604 }
 0x26f   : > { %v1647_v56 = vpop.xlane.xlu0 %1646  ;;  %v3320_v21 = vpop.eup %3319  ;;  %v1813_v54 = vmul.f32 %v3318_v36, %v4155_v10  ;;  %3333 = vrcp.f32 %v1605_v5 }
 0x270   : > { %3335 = vrcp.f32 %v1647_v56  ;;  %1688 = vadd.xlane.f32.xlu1 %v4502_v51  ;;  %v1810_v41 = vmul.f32 %v3320_v21, %v4153_v23  ;;  %v4511_v12 = vpop.eup %3321  ;;  %v642_v21 = vpack.c.bf16 %v604_v14, %v603_v59  ;;  %v607_v14 = vld [vmem:[%s4169_s25 + $0x1b0] sm:$0xff] }
 0x271   : > { %1877 = vst [vmem:[%s4504_s7 + $0x98] sm:$0xff] %v1813_v54  ;;  %v1931_v56 = vpack.c.bf16 %v1813_v54, %v1812_v62 }
 0x272   : > { %v3324_v28 = vpop.eup %3323  ;;  %1690 = vadd.xlane.f32.xlu0 %v4511_v12  ;;  %v1649_v8 = vpop.xlane.xlu1 %1648  ;;  %1874 = vst [vmem:[%s4504_s7 + $0x80] sm:$0xff] %v1810_v41 }
 0x273   : > { %v4516_v32 = vpop.eup %3325  ;;  %3337 = vrcp.f32 %v1649_v8  ;;  %v1794_v10 = vmul.f32 %v3324_v28, %v4163_v44  ;;  %v4919_v8 = vld [vmem:[#allocation21_spill] sm:$0xff] }
 0x274   : > { %4916 = vst [vmem:[#allocation7_spill] sm:$0xff] %v4516_v32  ;;  %v4519_v50 = vpop.eup %3327  ;;  %1692 = vadd.xlane.f32.xlu1 %v4516_v32  ;;  %v4920_v32 = vld [vmem:[#allocation22_spill] sm:$0xff] }
 0x275   : > { %4917 = vst [vmem:[#allocation5_spill] sm:$0xff] %v4519_v50  ;;  %v3330_v23 = vpop.eup %3329  ;;  %1858 = vst [vmem:[%s4504_s7] sm:$0xff] %v1794_v10 }
 0x276   : > { %1694 = vadd.xlane.f32.xlu0 %v4519_v50  ;;  %v1643_v38 = vpop.xlane.xlu0 %1642  ;;  %v1811_v19 = vmul.f32 %v3330_v23, %v4918_v45  ;;  %v4527_v7 = vpop.eup %3331  ;;  %v605_v45 = vld [vmem:[%s4169_s25 + $0x1a0] sm:$0xff]  ;;  %v606_v50 = vld [vmem:[%s4169_s25 + $0x1a8] sm:$0xff] }
 0x277   : > { %v1645_v36 = vpop.xlane.xlu1 %1644  ;;  %3339 = vrcp.f32 %v1643_v38  ;;  %v643_v62 = vpack.c.bf16 %v606_v50, %v605_v45  ;;  %v4922_v50 = vld [vmem:[#allocation24_spill] sm:$0xff]  ;;  %v610_v45 = vld [vmem:[%s4169_s25 + $0x1c8] sm:$0xff] }
 0x278   : > { %3341 = vrcp.f32 %v1645_v36  ;;  %1696 = vadd.xlane.f32.xlu1 %v4527_v7  ;;  %1875 = vst [vmem:[%s4504_s7 + $0x88] sm:$0xff] %v1811_v19  ;;  %v1930_v44 = vpack.c.bf16 %v1811_v19, %v1810_v41  ;;  %v4921_v19 = vld [vmem:[#allocation23_spill] sm:$0xff] }
 0x279   : > { %v3334_v5 = vpop.eup %3333 }
 0x27a   : > { %v3336_v28 = vpop.eup %3335  ;;  %3041 = vmatprep.mubr.bf16.mxu1 %v1930_v44  ;;  %v1795_v23 = vmul.f32 %v3334_v5, %v4919_v8  ;;  %v608_v44 = vld [vmem:[%s4169_s25 + $0x1b8] sm:$0xff] }
 0x27b   : > { %3042 = vmatmul.mubr.bf16.vlgmr.msra.gmra.mrb[32].mxu1 %v1931_v56  ;;  %v1816_v38 = vmul.f32 %v3336_v28, %v4920_v32  ;;  %v4923_v28 = vld [vmem:[#allocation25_spill] sm:$0xff] }
 0x27c   : > { %1859 = vst [vmem:[%s4504_s7 + $0x8] sm:$0xff] %v1795_v23  ;;  %v1922_v36 = vpack.c.bf16 %v1795_v23, %v1794_v10  ;;  %3090 = vmatpush3.bf16.msra.mxu1 %v4286_v17  ;;  %v644_v10 = vpack.c.bf16 %v608_v44, %v607_v14  ;;  %v609_v23 = vld [vmem:[%s4169_s25 + $0x1c0] sm:$0xff]  ;;  %v611_v14 = vld [vmem:[%s4169_s25 + $0x1d0] sm:$0xff]  ;;  %v612_v44 = vld [vmem:[%s4169_s25 + $0x1d8] sm:$0xff] }
 0x27d   : > { %v3338_v41 = vpop.eup %3337  ;;  %1880 = vst [vmem:[%s4504_s7 + $0xb0] sm:$0xff] %v1816_v38  ;;  %3091 = vmatprep.subr.bf16.mxu1 %v642_v21 }
 0x27e   : > { %3009 = vmatprep.mubr.bf16.mxu0 %v1922_v36  ;;  %v1655_v54 = vpop.xlane.xlu0 %1654  ;;  %v1817_v59 = vmul.f32 %v3338_v41, %v4921_v19 }
 0x27f   : > { %v1657_v32 = vpop.xlane.xlu1 %1656  ;;  %3343 = vrcp.f32 %v1655_v54 }
 0x280   : > { %3345 = vrcp.f32 %v1657_v32  ;;  %1881 = vst [vmem:[%s4504_s7 + $0xb8] sm:$0xff] %v1817_v59  ;;  %3092 = vmatpush3.bf16.msra.mxu1 %v642_v21  ;;  %v1933_v54 = vpack.c.bf16 %v1817_v59, %v1816_v38  ;;  %v645_v21 = vpack.c.bf16 %v610_v45, %v609_v23  ;;  %v646_v38 = vpack.c.bf16 %v612_v44, %v611_v14  ;;  %v4925_v59 = vld [vmem:[#allocation27_spill] sm:$0xff]  ;;  %v4926_v44 = vld [vmem:[#allocation28_spill] sm:$0xff] }
 0x281   : > { %v3340_v17 = vpop.eup %3339  ;;  %3093 = vmatprep.subr.bf16.mxu1 %v643_v62  ;;  %v615_v45 = vld [vmem:[%s4169_s25 + $0x1f0] sm:$0xff] }
 0x282   : > { %v3342_v5 = vpop.eup %3341  ;;  %v1814_v56 = vmul.f32 %v3340_v17, %v4922_v50  ;;  %v4924_v17 = vld [vmem:[#allocation26_spill] sm:$0xff] }
 0x283   : > { %v1815_v8 = vmul.f32 %v3342_v5, %v4923_v28  ;;  %v614_v28 = vld [vmem:[%s4169_s25 + $0x1e8] sm:$0xff] }
 0x284   : > { %1878 = vst [vmem:[%s4504_s7 + $0xa0] sm:$0xff] %v1814_v56  ;;  %3094 = vmatpush3.bf16.msra.mxu1 %v643_v62 }
 0x285   : > { %1879 = vst [vmem:[%s4504_s7 + $0xa8] sm:$0xff] %v1815_v8  ;;  %v1932_v36 = vpack.c.bf16 %v1815_v8, %v1814_v56  ;;  %3095 = vmatprep.subr.bf16.mxu1 %v644_v10  ;;  %v613_v56 = vld [vmem:[%s4169_s25 + $0x1e0] sm:$0xff] }
 0x286   : > { %v1651_v41 = vpop.xlane.xlu0 %1650  ;;  %v647_v23 = vpack.c.bf16 %v614_v28, %v613_v56  ;;  %v4927_v56 = vld [vmem:[#allocation29_spill] sm:$0xff] }
 0x287   : > { %v1653_v19 = vpop.xlane.xlu1 %1652  ;;  %3045 = vmatprep.mubr.bf16.mxu1 %v1932_v36  ;;  %3347 = vrcp.f32 %v1651_v41  ;;  %v616_v36 = vld [vmem:[%s4169_s25 + $0x1f8] sm:$0xff] }
 0x288   : > { %3349 = vrcp.f32 %v1653_v19  ;;  %3046 = vmatmul.mubr.bf16.gmra.mrb[36].mxu1 %v1933_v54  ;;  %v648_v14 = vpack.c.bf16 %v616_v36, %v615_v45  ;;  %v4929_v36 = vld [vmem:[#allocation31_spill] sm:$0xff] }
 0x289   : > { %v3344_v32 = vpop.eup %3343  ;;  %3096 = vmatpush3.bf16.msra.mxu1 %v644_v10 }
 0x28a   : > { %v3346_v62 = vpop.eup %3345  ;;  %v1820_v5 = vmul.f32 %v3344_v32, %v4924_v17  ;;  %3097 = vmatprep.subr.bf16.mxu1 %v645_v21 }
 0x28b   : > { %v1821_v50 = vmul.f32 %v3346_v62, %v4925_v59 }
 0x28c   : > { %1884 = vst [vmem:[%s4504_s7 + $0xd0] sm:$0xff] %v1820_v5 }
 0x28d   : > { %1885 = vst [vmem:[%s4504_s7 + $0xd8] sm:$0xff] %v1821_v50  ;;  %3098 = vmatpush3.bf16.msra.mxu1 %v645_v21  ;;  %v1935_v17 = vpack.c.bf16 %v1821_v50, %v1820_v5 }
 0x28e   : > { %v1663_v8 = vpop.xlane.xlu0 %1662  ;;  %3099 = vmatprep.subr.bf16.mxu1 %v646_v38 }
 0x28f   : > { %v1665_v10 = vpop.xlane.xlu1 %1664  ;;  %3351 = vrcp.f32 %v1663_v8  ;;  %v4928_v8 = vld [vmem:[#allocation30_spill] sm:$0xff] }
 0x290   : > { %3353 = vrcp.f32 %v1665_v10 }
 0x291   : > { %v3348_v41 = vpop.eup %3347  ;;  %3100 = vmatpush3.bf16.msra.mxu1 %v646_v38 }
 0x292   : > { %v3350_v54 = vpop.eup %3349  ;;  %v1818_v19 = vmul.f32 %v3348_v41, %v4236_v26  ;;  %3101 = vmatprep.subr.bf16.mxu1 %v647_v23 }
 0x293   : > { %v1819_v32 = vmul.f32 %v3350_v54, %v4926_v44  ;;  %v4930_v54 = vld [vmem:[#allocation32_spill] sm:$0xff] }
 0x294   : > { %1882 = vst [vmem:[%s4504_s7 + $0xc0] sm:$0xff] %v1818_v19 }
 0x295   : > { %1883 = vst [vmem:[%s4504_s7 + $0xc8] sm:$0xff] %v1819_v32  ;;  %v1934_v21 = vpack.c.bf16 %v1819_v32, %v1818_v19  ;;  %3102 = vmatpush3.bf16.msra.mxu1 %v647_v23 }
 0x296   : > { %v1659_v62 = vpop.xlane.xlu0 %1658  ;;  %3103 = vmatprep.subr.bf16.mxu1 %v648_v14 }
 0x297   : > { %v1661_v59 = vpop.xlane.xlu1 %1660  ;;  %3049 = vmatprep.mubr.bf16.mxu1 %v1934_v21  ;;  %3355 = vrcp.f32 %v1659_v62 }
 0x298   : > { %3357 = vrcp.f32 %v1661_v59  ;;  %3050 = vmatmul.mubr.bf16.gmra.mrb[40].mxu1 %v1935_v17  ;;  %v4931_v17 = vld [vmem:[#allocation33_spill] sm:$0xff] }
 0x299   : > { %v3352_v26 = vpop.eup %3351  ;;  %3104 = vmatpush3.bf16.msra.mxu1 %v648_v14 }
 0x29a   : > { %v3354_v38 = vpop.eup %3353  ;;  %v1824_v28 = vmul.f32 %v3352_v26, %v4927_v56 }
 0x29b   : > { %v1825_v10 = vmul.f32 %v3354_v38, %v4928_v8 }
 0x29c   : > { %1888 = vst [vmem:[%s4504_s7 + $0xf0] sm:$0xff] %v1824_v28 }
 0x29d   : > { %1889 = vst [vmem:[%s4504_s7 + $0xf8] sm:$0xff] %v1825_v10  ;;  %v1937_v44 = vpack.c.bf16 %v1825_v10, %v1824_v28 }
 0x29f   : > { %v1703_v23 = vpop.xlane.xlu0 %1702 }
 0x2a0   : > { %3359 = vrcp.f32 %v1703_v23 }
 0x2a1   : > { %v3356_v5 = vpop.eup %3355  ;;  %v1705_v50 = vpop.xlane.xlu1 %1704 }
 0x2a2   : > { %v3358_v45 = vpop.eup %3357  ;;  %3361 = vrcp.f32 %v1705_v50  ;;  %v1822_v41 = vmul.f32 %v3356_v5, %v4929_v36 }
 0x2a3   : > { %v1823_v19 = vmul.f32 %v3358_v45, %v4930_v54 }
 0x2a4   : > { %1886 = vst [vmem:[%s4504_s7 + $0xe0] sm:$0xff] %v1822_v41 }
 0x2a5   : > { %1887 = vst [vmem:[%s4504_s7 + $0xe8] sm:$0xff] %v1823_v19  ;;  %v1936_v14 = vpack.c.bf16 %v1823_v19, %v1822_v41 }
 0x2a7   : > { %3053 = vmatprep.mubr.bf16.mxu1 %v1936_v14  ;;  %v1699_v32 = vpop.xlane.xlu0 %1698 }
 0x2a8   : > { %3363 = vrcp.f32 %v1699_v32  ;;  %3054 = vmatmul.mubr.bf16.gmra.mrb[44].mxu1 %v1937_v44 }
 0x2a9   : > { %v1701_v21 = vpop.xlane.xlu1 %1700 }
 0x2aa   : > { %v3360_v62 = vpop.eup %3359  ;;  %3365 = vrcp.f32 %v1701_v21  ;;  %v4932_v21 = vld [vmem:[#allocation34_spill] sm:$0xff] }
 0x2ab   : > { %v1844_v59 = vmul.f32 %v3360_v62, %v4931_v17 }
 0x2ac   : > { %v3362_v26 = vpop.eup %3361 }
 0x2ad   : > { %1908 = vst [vmem:[%s4504_s7 + $0x190] sm:$0xff] %v1844_v59  ;;  %v1845_v38 = vmul.f32 %v3362_v26, %v4275_v34 }
 0x2af   : > { %1909 = vst [vmem:[%s4504_s7 + $0x198] sm:$0xff] %v1845_v38  ;;  %v1711_v56 = vpop.xlane.xlu0 %1710  ;;  %v1947_v34 = vpack.c.bf16 %v1845_v38, %v1844_v59 }
 0x2b0   : > { %3367 = vrcp.f32 %v1711_v56 }
 0x2b1   : > { %v1713_v8 = vpop.xlane.xlu1 %1712 }
 0x2b2   : > { %v3364_v28 = vpop.eup %3363  ;;  %3369 = vrcp.f32 %v1713_v8 }
 0x2b3   : > { %v1707_v10 = vpop.xlane.xlu0 %1706  ;;  %v1842_v23 = vmul.f32 %v3364_v28, %v4283_v15 }
 0x2b4   : > { %v3366_v5 = vpop.eup %3365  ;;  %3371 = vrcp.f32 %v1707_v10 }
 0x2b5   : > { %v1709_v50 = vpop.xlane.xlu1 %1708  ;;  %v1843_v45 = vmul.f32 %v3366_v5, %v4291_v60  ;;  %1906 = vst [vmem:[%s4504_s7 + $0x180] sm:$0xff] %v1842_v23 }
 0x2b6   : > { %3373 = vrcp.f32 %v1709_v50 }
 0x2b7   : > { %1907 = vst [vmem:[%s4504_s7 + $0x188] sm:$0xff] %v1843_v45  ;;  %v1946_v36 = vpack.c.bf16 %v1843_v45, %v1842_v23 }
 0x2b9   : > { %3105 = vmatprep.mubr.bf16.mxu1 %v1946_v36 }
 0x2ba   : > { %v3368_v41 = vpop.eup %3367  ;;  %3106 = vmatmul.mubr.bf16.vlgmr.msra.gmra.mrb[48].mxu1 %v1947_v34 }
 0x2bb   : > { %v1719_v54 = vpop.xlane.xlu0 %1718  ;;  %v1848_v19 = vmul.f32 %v3368_v41, %v4298_v37 }
 0x2bc   : > { %v3370_v15 = vpop.eup %3369  ;;  %3375 = vrcp.f32 %v1719_v54 }
 0x2bd   : > { %v1721_v14 = vpop.xlane.xlu1 %1720  ;;  %v1849_v44 = vmul.f32 %v3370_v15, %v4302_v48  ;;  %1912 = vst [vmem:[%s4504_s7 + $0x1b0] sm:$0xff] %v1848_v19 }
 0x2be   : > { %v3372_v60 = vpop.eup %3371  ;;  %3377 = vrcp.f32 %v1721_v14 }
 0x2bf   : > { %v1715_v32 = vpop.xlane.xlu0 %1714  ;;  %v1846_v62 = vmul.f32 %v3372_v60, %v4932_v21  ;;  %1913 = vst [vmem:[%s4504_s7 + $0x1b8] sm:$0xff] %v1849_v44  ;;  %v1949_v48 = vpack.c.bf16 %v1849_v44, %v1848_v19 }
 0x2c0   : > { %v3374_v17 = vpop.eup %3373  ;;  %3379 = vrcp.f32 %v1715_v32 }
 0x2c1   : > { %v1717_v59 = vpop.xlane.xlu1 %1716  ;;  %v1847_v26 = vmul.f32 %v3374_v17, %v4310_v22  ;;  %1910 = vst [vmem:[%s4504_s7 + $0x1a0] sm:$0xff] %v1846_v62 }
 0x2c2   : > { %3381 = vrcp.f32 %v1717_v59 }
 0x2c3   : > { %v1727_v37 = vpop.xlane.xlu0 %1726  ;;  %1911 = vst [vmem:[%s4504_s7 + $0x1a8] sm:$0xff] %v1847_v26  ;;  %v1948_v38 = vpack.c.bf16 %v1847_v26, %v1846_v62 }
 0x2c4   : > { %3383 = vrcp.f32 %v1727_v37 }
 0x2c5   : > { %v1729_v56 = vpop.xlane.xlu1 %1728  ;;  %3109 = vmatprep.mubr.bf16.mxu1 %v1948_v38 }
 0x2c6   : > { %v3376_v8 = vpop.eup %3375  ;;  %3385 = vrcp.f32 %v1729_v56  ;;  %3110 = vmatmul.mubr.bf16.gmra.mrb[52].mxu1 %v1949_v48  ;;  %v587_v48 = vld [vmem:[%s4169_s25 + $0x110] sm:$0xff]  ;;  %v588_v56 = vld [vmem:[%s4169_s25 + $0x118] sm:$0xff] }
 0x2c7   : > { %v1723_v28 = vpop.xlane.xlu0 %1722  ;;  %v1852_v10 = vmul.f32 %v3376_v8, %v4318_v49 }
 0x2c8   : > { %v3378_v23 = vpop.eup %3377  ;;  %3387 = vrcp.f32 %v1723_v28 }
 0x2c9   : > { %v1725_v22 = vpop.xlane.xlu1 %1724  ;;  %v1853_v5 = vmul.f32 %v3378_v23, %v4324_v4  ;;  %1916 = vst [vmem:[%s4504_s7 + $0x1d0] sm:$0xff] %v1852_v10 }
 0x2ca   : > { %v3380_v50 = vpop.eup %3379  ;;  %3389 = vrcp.f32 %v1725_v22  ;;  %v634_v22 = vpack.c.bf16 %v588_v56, %v587_v48 }
 0x2cb   : > { %v1607_v45 = vpop.xlane.xlu0 %1606  ;;  %v1850_v36 = vmul.f32 %v3380_v50, %v4329_v9  ;;  %1917 = vst [vmem:[%s4504_s7 + $0x1d8] sm:$0xff] %v1853_v5  ;;  %v1951_v9 = vpack.c.bf16 %v1853_v5, %v1852_v10  ;;  %v589_v50 = vld [vmem:[%s4169_s25 + $0x120] sm:$0xff] }
 0x2cc   : > { %v3382_v34 = vpop.eup %3381  ;;  %3391 = vrcp.f32 %v1607_v45  ;;  %v590_v45 = vld [vmem:[%s4169_s25 + $0x128] sm:$0xff] }
 0x2cd   : > { %v1609_v41 = vpop.xlane.xlu1 %1608  ;;  %v1851_v54 = vmul.f32 %v3382_v34, %v4334_v3  ;;  %1914 = vst [vmem:[%s4504_s7 + $0x1c0] sm:$0xff] %v1850_v36 }
 0x2ce   : > { %v3384_v49 = vpop.eup %3383  ;;  %3393 = vrcp.f32 %v1609_v41 }
 0x2cf   : > { %v1611_v19 = vpop.xlane.xlu0 %1610  ;;  %1915 = vst [vmem:[%s4504_s7 + $0x1c8] sm:$0xff] %v1851_v54  ;;  %v1950_v4 = vpack.c.bf16 %v1851_v54, %v1850_v36  ;;  %v1856_v15 = vmul.f32 %v3384_v49, %v4339_v18  ;;  %v635_v49 = vpack.c.bf16 %v590_v45, %v589_v50 }
 0x2d0   : > { %v3386_v14 = vpop.eup %3385  ;;  %3395 = vrcp.f32 %v1611_v19 }
 0x2d1   : > { %v1613_v44 = vpop.xlane.xlu1 %1612  ;;  %3113 = vmatprep.mubr.bf16.mxu1 %v1950_v4  ;;  %v1857_v60 = vmul.f32 %v3386_v14, %v4344_v55  ;;  %1920 = vst [vmem:[%s4504_s7 + $0x1f0] sm:$0xff] %v1856_v15  ;;  %v591_v4 = vld [vmem:[%s4169_s25 + $0x130] sm:$0xff] }
 0x2d2   : > { %v3388_v3 = vpop.eup %3387  ;;  %3397 = vrcp.f32 %v1613_v44  ;;  %3114 = vmatmul.mubr.bf16.gmra.mrb[56].mxu1 %v1951_v9 }
 0x2d3   : > { %v1615_v32 = vpop.xlane.xlu0 %1614  ;;  %v1854_v21 = vmul.f32 %v3388_v3, %v4349_v13  ;;  %1921 = vst [vmem:[%s4504_s7 + $0x1f8] sm:$0xff] %v1857_v60  ;;  %v1953_v13 = vpack.c.bf16 %v1857_v60, %v1856_v15  ;;  %v592_v15 = vld [vmem:[%s4169_s25 + $0x138] sm:$0xff] }
 0x2d4   : > { %v3390_v18 = vpop.eup %3389  ;;  %3399 = vrcp.f32 %v1615_v32  ;;  %v636_v60 = vpack.c.bf16 %v592_v15, %v591_v4  ;;  %v593_v32 = vld [vmem:[%s4169_s25 + $0x140] sm:$0xff] }
 0x2d5   : > { %v1617_v62 = vpop.xlane.xlu1 %1616  ;;  %v1855_v17 = vmul.f32 %v3390_v18, %v4354_v30  ;;  %1918 = vst [vmem:[%s4504_s7 + $0x1e0] sm:$0xff] %v1854_v21 }
 0x2d6   : > { %v3392_v59 = vpop.eup %3391  ;;  %3401 = vrcp.f32 %v1617_v62 }
 0x2d7   : > { %v1796_v55 = vmul.f32 %v3392_v59, %v4361_v11  ;;  %v1619_v26 = vpop.xlane.xlu0 %1618  ;;  %1919 = vst [vmem:[%s4504_s7 + $0x1e8] sm:$0xff] %v1855_v17  ;;  %v1952_v37 = vpack.c.bf16 %v1855_v17, %v1854_v21  ;;  %v594_v21 = vld [vmem:[%s4169_s25 + $0x148] sm:$0xff] }
 0x2d8   : > { %v3394_v38 = vpop.eup %3393  ;;  %3403 = vrcp.f32 %v1619_v26 }
 0x2d9   : > { %1860 = vst [vmem:[%s4504_s7 + $0x10] sm:$0xff] %v1796_v55  ;;  %v1797_v8 = vmul.f32 %v3394_v38, %v4366_v52  ;;  %v1621_v30 = vpop.xlane.xlu1 %1620  ;;  %3117 = vmatprep.mubr.bf16.mxu1 %v1952_v37  ;;  %v595_v37 = vld [vmem:[%s4169_s25 + $0x150] sm:$0xff]  ;;  %v596_v38 = vld [vmem:[%s4169_s25 + $0x158] sm:$0xff] }
 0x2da   : > { %v3396_v28 = vpop.eup %3395  ;;  %3405 = vrcp.f32 %v1621_v30  ;;  %3118 = vmatmul.mubr.bf16.gmra.mrb[60].mxu1 %v1953_v13  ;;  %v638_v30 = vpack.c.bf16 %v596_v38, %v595_v37 }
 0x2db   : > { %1861 = vst [vmem:[%s4504_s7 + $0x18] sm:$0xff] %v1797_v8  ;;  %v1623_v11 = vpop.xlane.xlu0 %1622  ;;  %v1923_v10 = vpack.c.bf16 %v1797_v8, %v1796_v55  ;;  %v1798_v23 = vmul.f32 %v3396_v28, %v4373_v40  ;;  %v637_v55 = vpack.c.bf16 %v594_v21, %v593_v32 }
 0x2dc   : > { %v3398_v5 = vpop.eup %3397  ;;  %3407 = vrcp.f32 %v1623_v11  ;;  %v597_v11 = vld [vmem:[%s4169_s25 + $0x160] sm:$0xff] }
 0x2dd   : > { %v1625_v36 = vpop.xlane.xlu1 %1624  ;;  %3010 = vmatmul.mubr.bf16.vlgmr.msra.gmra.mrb[32].mxu0 %v1923_v10  ;;  %v1799_v52 = vmul.f32 %v3398_v5, %v4378_v27  ;;  %1862 = vst [vmem:[%s4504_s7 + $0x20] sm:$0xff] %v1798_v23  ;;  %v598_v10 = vld [vmem:[%s4169_s25 + $0x168] sm:$0xff] }
 0x2de   : > { %v3400_v34 = vpop.eup %3399  ;;  %3409 = vrcp.f32 %v1625_v36  ;;  %3058 = vmatpush3.bf16.msra.mxu0 %v4465_v16  ;;  %v639_v45 = vpack.c.bf16 %v598_v10, %v597_v11 }
 0x2df   : > { %v1627_v41 = vpop.xlane.xlu0 %1626  ;;  %1863 = vst [vmem:[%s4504_s7 + $0x28] sm:$0xff] %v1799_v52  ;;  %v1924_v40 = vpack.c.bf16 %v1799_v52, %v1798_v23  ;;  %3059 = vmatprep.subr.bf16.mxu0 %v634_v22  ;;  %v1800_v54 = vmul.f32 %v3400_v34, %v4387_v2  ;;  %v599_v52 = vld [vmem:[%s4169_s25 + $0x170] sm:$0xff]  ;;  %v600_v34 = vld [vmem:[%s4169_s25 + $0x178] sm:$0xff] }
 0x2e0   : > { %v3402_v19 = vpop.eup %3401  ;;  %3411 = vrcp.f32 %v1627_v41 }
 0x2e1   : > { %v1629_v27 = vpop.xlane.xlu1 %1628  ;;  %3013 = vmatprep.mubr.bf16.mxu0 %v1924_v40  ;;  %v1801_v14 = vmul.f32 %v3402_v19, %v4394_v57  ;;  %1864 = vst [vmem:[%s4504_s7 + $0x30] sm:$0xff] %v1800_v54 }
 0x2e2   : > { %v3404_v16 = vpop.eup %3403  ;;  %3413 = vrcp.f32 %v1629_v27  ;;  %3060 = vmatpush3.bf16.msra.mxu0 %v634_v22 }
 0x2e3   : > { %v1631_v9 = vpop.xlane.xlu0 %1630  ;;  %1865 = vst [vmem:[%s4504_s7 + $0x38] sm:$0xff] %v1801_v14  ;;  %v1925_v44 = vpack.c.bf16 %v1801_v14, %v1800_v54  ;;  %3061 = vmatprep.subr.bf16.mxu0 %v635_v49  ;;  %v1802_v2 = vmul.f32 %v3404_v16, %v4401_v43 }
 0x2e4   : > { %v3406_v3 = vpop.eup %3405  ;;  %3415 = vrcp.f32 %v1631_v9 }
 0x2e5   : > { %v1633_v18 = vpop.xlane.xlu1 %1632  ;;  %3014 = vmatmul.mubr.bf16.gmra.mrb[36].mxu0 %v1925_v44  ;;  %v1803_v57 = vmul.f32 %v3406_v3, %v4408_v35  ;;  %1866 = vst [vmem:[%s4504_s7 + $0x40] sm:$0xff] %v1802_v2 }
 0x2e6   : > { %v3408_v62 = vpop.eup %3407  ;;  %3417 = vrcp.f32 %v1633_v18  ;;  %3062 = vmatpush3.bf16.msra.mxu0 %v635_v49 }
 0x2e7   : > { %v1667_v17 = vpop.xlane.xlu0 %1666  ;;  %1867 = vst [vmem:[%s4504_s7 + $0x48] sm:$0xff] %v1803_v57  ;;  %v1926_v59 = vpack.c.bf16 %v1803_v57, %v1802_v2  ;;  %3063 = vmatprep.subr.bf16.mxu0 %v636_v60  ;;  %v1804_v43 = vmul.f32 %v3408_v62, %v4417_v46 }
 0x2e8   : > { %v3410_v26 = vpop.eup %3409  ;;  %3419 = vrcp.f32 %v1667_v17 }
 0x2e9   : > { %v1669_v13 = vpop.xlane.xlu1 %1668  ;;  %3017 = vmatprep.mubr.bf16.mxu0 %v1926_v59  ;;  %v1805_v35 = vmul.f32 %v3410_v26, %v4422_v29  ;;  %1868 = vst [vmem:[%s4504_s7 + $0x50] sm:$0xff] %v1804_v43 }
 0x2ea   : > { %v3412_v48 = vpop.eup %3411  ;;  %3421 = vrcp.f32 %v1669_v13  ;;  %3064 = vmatpush3.bf16.msra.mxu0 %v636_v60 }
 0x2eb   : > { %v1671_v56 = vpop.xlane.xlu0 %1670  ;;  %1869 = vst [vmem:[%s4504_s7 + $0x58] sm:$0xff] %v1805_v35  ;;  %v1927_v8 = vpack.c.bf16 %v1805_v35, %v1804_v43  ;;  %3065 = vmatprep.subr.bf16.mxu0 %v637_v55  ;;  %v1806_v46 = vmul.f32 %v3412_v48, %v4429_v20 }
 0x2ec   : > { %v3414_v28 = vpop.eup %3413  ;;  %3423 = vrcp.f32 %v1671_v56 }
 0x2ed   : > { %v1673_v23 = vpop.xlane.xlu1 %1672  ;;  %3018 = vmatmul.mubr.bf16.gmra.mrb[40].mxu0 %v1927_v8  ;;  %v1807_v29 = vmul.f32 %v3414_v28, %v4434_v61  ;;  %1870 = vst [vmem:[%s4504_s7 + $0x60] sm:$0xff] %v1806_v46  ;;  %v4933_v28 = vld [vmem:[#allocation7_spill] sm:$0xff] }
 0x2ee   : > { %v3416_v22 = vpop.eup %3415  ;;  %3425 = vrcp.f32 %v1673_v23  ;;  %3066 = vmatpush3.bf16.msra.mxu0 %v637_v55  ;;  %v4934_v23 = vld [vmem:[#allocation5_spill] sm:$0xff] }
 0x2ef   : > { %v1675_v5 = vpop.xlane.xlu0 %1674  ;;  %1871 = vst [vmem:[%s4504_s7 + $0x68] sm:$0xff] %v1807_v29  ;;  %v1928_v50 = vpack.c.bf16 %v1807_v29, %v1806_v46  ;;  %3067 = vmatprep.subr.bf16.mxu0 %v638_v30  ;;  %v1808_v20 = vmul.f32 %v3416_v22, %v4441_v24  ;;  %v640_v24 = vpack.c.bf16 %v600_v34, %v599_v52 }
 0x2f0   : > { %v3418_v36 = vpop.eup %3417  ;;  %3427 = vrcp.f32 %v1675_v5 }
 0x2f1   : > { %v1677_v41 = vpop.xlane.xlu1 %1676  ;;  %3021 = vmatprep.mubr.bf16.mxu0 %v1928_v50  ;;  %v1809_v61 = vmul.f32 %v3418_v36, %v4446_v1  ;;  %1872 = vst [vmem:[%s4504_s7 + $0x70] sm:$0xff] %v1808_v20 }
 0x2f2   : > { %v3420_v40 = vpop.eup %3419  ;;  %3429 = vrcp.f32 %v1677_v41  ;;  %3068 = vmatpush3.bf16.msra.mxu0 %v638_v30 }
 0x2f3   : > { %v1679_v54 = vpop.xlane.xlu0 %1678  ;;  %1873 = vst [vmem:[%s4504_s7 + $0x78] sm:$0xff] %v1809_v61  ;;  %v1929_v49 = vpack.c.bf16 %v1809_v61, %v1808_v20  ;;  %3069 = vmatprep.subr.bf16.mxu0 %v639_v45  ;;  %v1826_v19 = vmul.f32 %v3420_v40, %v4453_v39 }
 0x2f4   : > { %v3422_v4 = vpop.eup %3421  ;;  %3431 = vrcp.f32 %v1679_v54 }
 0x2f5   : > { %v1681_v15 = vpop.xlane.xlu1 %1680  ;;  %3022 = vmatmul.mubr.bf16.gmra.mrb[44].mxu0 %v1929_v49  ;;  %v1827_v1 = vmul.f32 %v3422_v4, %v4459_v25  ;;  %1890 = vst [vmem:[%s4504_s7 + $0x100] sm:$0xff] %v1826_v19 }
 0x2f6   : > { %v3424_v27 = vpop.eup %3423  ;;  %3433 = vrcp.f32 %v1681_v15  ;;  %3070 = vmatpush3.bf16.msra.mxu0 %v639_v45 }
 0x2f7   : > { %v1828_v14 = vmul.f32 %v3424_v27, %v4467_v63  ;;  %v1683_v16 = vpop.xlane.xlu0 %1682  ;;  %3071 = vmatprep.subr.bf16.mxu0 %v640_v24  ;;  %1891 = vst [vmem:[%s4504_s7 + $0x108] sm:$0xff] %v1827_v1  ;;  %v1938_v9 = vpack.c.bf16 %v1827_v1, %v1826_v19 }
 0x2f8   : > { %v3426_v44 = vpop.eup %3425  ;;  %3435 = vrcp.f32 %v1683_v16 }
 0x2f9   : > { %1892 = vst [vmem:[%s4504_s7 + $0x110] sm:$0xff] %v1828_v14  ;;  %v1829_v39 = vmul.f32 %v3426_v44, %v4471_v6  ;;  %v1685_v2 = vpop.xlane.xlu1 %1684  ;;  %3073 = vmatprep.mubr.bf16.mxu0 %v1938_v9 }
 0x2fa   : > { %v3428_v25 = vpop.eup %3427  ;;  %3437 = vrcp.f32 %v1685_v2  ;;  %3072 = vmatpush3.bf16.msra.mxu0 %v640_v24 }
 0x2fb   : > { %1893 = vst [vmem:[%s4504_s7 + $0x118] sm:$0xff] %v1829_v39  ;;  %v1687_v60 = vpop.xlane.xlu0 %1686  ;;  %v1939_v3 = vpack.c.bf16 %v1829_v39, %v1828_v14  ;;  %v1830_v63 = vmul.f32 %v3428_v25, %v4475_v53 }
 0x2fc   : > { %v3430_v32 = vpop.eup %3429  ;;  %3439 = vrcp.f32 %v1687_v60 }
 0x2fd   : > { %v1689_v21 = vpop.xlane.xlu1 %1688  ;;  %3074 = vmatmul.mubr.bf16.vlgmr.msra.gmra.mrb[48].mxu0 %v1939_v3  ;;  %v1831_v18 = vmul.f32 %v3430_v32, %v4480_v0  ;;  %1894 = vst [vmem:[%s4504_s7 + $0x120] sm:$0xff] %v1830_v63 }
 0x2fe   : > { %v3432_v6 = vpop.eup %3431  ;;  %3441 = vrcp.f32 %v1689_v21 }
 0x2ff   : > { %v1691_v57 = vpop.xlane.xlu0 %1690  ;;  %1895 = vst [vmem:[%s4504_s7 + $0x128] sm:$0xff] %v1831_v18  ;;  %v1940_v62 = vpack.c.bf16 %v1831_v18, %v1830_v63  ;;  %v1832_v17 = vmul.f32 %v3432_v6, %v4484_v47 }
 0x300   : > { %v3434_v59 = vpop.eup %3433  ;;  %3443 = vrcp.f32 %v1691_v57 }
 0x301   : > { %v1693_v53 = vpop.xlane.xlu1 %1692  ;;  %3077 = vmatprep.mubr.bf16.mxu0 %v1940_v62  ;;  %v1833_v43 = vmul.f32 %v3434_v59, %v4488_v58  ;;  %1896 = vst [vmem:[%s4504_s7 + $0x130] sm:$0xff] %v1832_v17 }
 0x302   : > { %v3436_v55 = vpop.eup %3435  ;;  %3445 = vrcp.f32 %v1693_v53 }
 0x303   : > { %v1695_v0 = vpop.xlane.xlu0 %1694  ;;  %1897 = vst [vmem:[%s4504_s7 + $0x138] sm:$0xff] %v1833_v43  ;;  %v1941_v26 = vpack.c.bf16 %v1833_v43, %v1832_v17  ;;  %v1834_v37 = vmul.f32 %v3436_v55, %v4493_v33 }
 0x304   : > { %v3438_v38 = vpop.eup %3437  ;;  %3447 = vrcp.f32 %v1695_v0 }
 0x305   : > { %v1697_v47 = vpop.xlane.xlu1 %1696  ;;  %3078 = vmatmul.mubr.bf16.gmra.mrb[52].mxu0 %v1941_v26  ;;  %v1835_v13 = vmul.f32 %v3438_v38, %v4496_v42  ;;  %1898 = vst [vmem:[%s4504_s7 + $0x140] sm:$0xff] %v1834_v37 }
 0x306   : > { %v3440_v35 = vpop.eup %3439  ;;  %3449 = vrcp.f32 %v1697_v47 }
 0x307   : > { %1899 = vst [vmem:[%s4504_s7 + $0x148] sm:$0xff] %v1835_v13  ;;  %v1942_v58 = vpack.c.bf16 %v1835_v13, %v1834_v37  ;;  %v1836_v48 = vmul.f32 %v3440_v35, %v4499_v31 }
 0x308   : > { %v3442_v56 = vpop.eup %3441 }
 0x309   : > { %3081 = vmatprep.mubr.bf16.mxu0 %v1942_v58  ;;  %v1837_v33 = vmul.f32 %v3442_v56, %v4502_v51  ;;  %1900 = vst [vmem:[%s4504_s7 + $0x150] sm:$0xff] %v1836_v48 }
 0x30a   : > { %v3444_v8 = vpop.eup %3443 }
 0x30b   : > { %1901 = vst [vmem:[%s4504_s7 + $0x158] sm:$0xff] %v1837_v33  ;;  %v1943_v46 = vpack.c.bf16 %v1837_v33, %v1836_v48  ;;  %v1838_v42 = vmul.f32 %v3444_v8, %v4511_v12 }
 0x30c   : > { %v3446_v30 = vpop.eup %3445 }
 0x30d   : > { %3082 = vmatmul.mubr.bf16.gmra.mrb[56].mxu0 %v1943_v46  ;;  %v1839_v11 = vmul.f32 %v3446_v30, %v4933_v28  ;;  %1902 = vst [vmem:[%s4504_s7 + $0x160] sm:$0xff] %v1838_v42 }
 0x30e   : > { %v3448_v10 = vpop.eup %3447 }
 0x30f   : > { %1903 = vst [vmem:[%s4504_s7 + $0x168] sm:$0xff] %v1839_v11  ;;  %v1944_v31 = vpack.c.bf16 %v1839_v11, %v1838_v42  ;;  %v1840_v29 = vmul.f32 %v3448_v10, %v4934_v23 }
 0x310   : > { %v3450_v22 = vpop.eup %3449 }
 0x311   : > { %3085 = vmatprep.mubr.bf16.mxu0 %v1944_v31  ;;  %v1841_v51 = vmul.f32 %v3450_v22, %v4527_v7  ;;  %1904 = vst [vmem:[%s4504_s7 + $0x170] sm:$0xff] %v1840_v29 }
 0x313   : > { %1905 = vst [vmem:[%s4504_s7 + $0x178] sm:$0xff] %v1841_v51  ;;  %v1945_v5 = vpack.c.bf16 %v1841_v51, %v1840_v29 }
 0x315   : > { %3086 = vmatmul.mubr.bf16.gmra.mrb[60].mxu0 %v1945_v5 }
 0x34e   : > { %v3043_v50 = vpop.f32.mrb[32].mxu1 }
 0x34f   : > { %2362 = vrot.lane.b32.xlu1 %v3043_v50, %s3515_s8  ;;  %v2085_v12 = vpop.f32.mrb[33].mxu1 }
 0x350   : > { %2358 = vrot.lane.b32.xlu0 %v2085_v12, %s3515_s8  ;;  %v3044_v20 = vpop.f32.mrb[34].mxu1 }
 0x351   : > { %v2088_v45 = vpop.f32.mrb[35].mxu1 }
 0x353   : > { %2364 = vrot.lane.b32.xlu1 %v3044_v20, %s3515_s8 }
 0x357   : > { %2360 = vrot.lane.b32.xlu1 %v2088_v45, %s3515_s8 }
 0x35b   : > { %v3047_v36 = vpop.f32.mrb[36].mxu1 }
 0x35c   : > { %2370 = vrot.lane.b32.xlu0 %v3047_v36, %s3515_s8  ;;  %v2101_v7 = vpop.f32.mrb[37].mxu1 }
 0x35d   : > { %v3048_v52 = vpop.f32.mrb[38].mxu1 }
 0x35e   : > { %2372 = vrot.lane.b32.xlu1 %v3048_v52, %s3515_s8  ;;  %v2104_v34 = vpop.f32.mrb[39].mxu1 }
 0x360   : > { %2366 = vrot.lane.b32.xlu0 %v2101_v7, %s3515_s8 }
 0x362   : > { %2368 = vrot.lane.b32.xlu1 %v2104_v34, %s3515_s8 }
 0x36b   : > { %v3051_v41 = vpop.f32.mrb[40].mxu1 }
 0x36c   : > { %2378 = vrot.lane.b32.xlu0 %v3051_v41, %s3515_s8  ;;  %v2117_v61 = vpop.f32.mrb[41].mxu1 }
 0x36d   : > { %v3052_v40 = vpop.f32.mrb[42].mxu1 }
 0x36e   : > { %2380 = vrot.lane.b32.xlu1 %v3052_v40, %s3515_s8  ;;  %v2120_v54 = vpop.f32.mrb[43].mxu1 }
 0x370   : > { %2374 = vrot.lane.b32.xlu0 %v2117_v61, %s3515_s8 }
 0x372   : > { %2376 = vrot.lane.b32.xlu1 %v2120_v54, %s3515_s8 }
 0x37b   : > { %v3055_v49 = vpop.f32.mrb[44].mxu1 }
 0x37c   : > { %2386 = vrot.lane.b32.xlu0 %v3055_v49, %s3515_s8  ;;  %v2133_v24 = vpop.f32.mrb[45].mxu1 }
 0x37d   : > { %v3056_v19 = vpop.f32.mrb[46].mxu1 }
 0x37e   : > { %2388 = vrot.lane.b32.xlu1 %v3056_v19, %s3515_s8  ;;  %v2136_v4 = vpop.f32.mrb[47].mxu1 }
 0x380   : > { %2382 = vrot.lane.b32.xlu0 %v2133_v24, %s3515_s8 }
 0x382   : > { %2384 = vrot.lane.b32.xlu1 %v2136_v4, %s3515_s8 }
 0x38d   : > { %v3107_v15 = vpop.f32.mrb[48].mxu1 }
 0x38e   : > { %2426 = vrot.lane.b32.xlu0 %v3107_v15, %s3515_s8  ;;  %v2279_v1 = vpop.f32.mrb[49].mxu1 }
 0x38f   : > { %v3108_v27 = vpop.f32.mrb[50].mxu1 }
 0x390   : > { %2428 = vrot.lane.b32.xlu1 %v3108_v27, %s3515_s8  ;;  %v2282_v14 = vpop.f32.mrb[51].mxu1 }
 0x392   : > { %2422 = vrot.lane.b32.xlu0 %v2279_v1, %s3515_s8 }
 0x394   : > { %2424 = vrot.lane.b32.xlu1 %v2282_v14, %s3515_s8 }
 0x399   : > { %v3111_v16 = vpop.f32.mrb[52].mxu1 }
 0x39a   : > { %2434 = vrot.lane.b32.xlu0 %v3111_v16, %s3515_s8  ;;  %v2295_v9 = vpop.f32.mrb[53].mxu1 }
 0x39b   : > { %v3112_v44 = vpop.f32.mrb[54].mxu1 }
 0x39c   : > { %2436 = vrot.lane.b32.xlu1 %v3112_v44, %s3515_s8  ;;  %v2298_v39 = vpop.f32.mrb[55].mxu1 }
 0x39e   : > { %2430 = vrot.lane.b32.xlu0 %v2295_v9, %s3515_s8 }
 0x3a0   : > { %2432 = vrot.lane.b32.xlu1 %v2298_v39, %s3515_s8 }
 0x3a5   : > { %v3115_v2 = vpop.f32.mrb[56].mxu1 }
 0x3a6   : > { %2442 = vrot.lane.b32.xlu0 %v3115_v2, %s3515_s8  ;;  %v2311_v25 = vpop.f32.mrb[57].mxu1 }
 0x3a7   : > { %v3116_v60 = vpop.f32.mrb[58].mxu1 }
 0x3a8   : > { %2444 = vrot.lane.b32.xlu1 %v3116_v60, %s3515_s8  ;;  %v2314_v3 = vpop.f32.mrb[59].mxu1 }
 0x3aa   : > { %2438 = vrot.lane.b32.xlu0 %v2311_v25, %s3515_s8 }
 0x3ac   : > { %2440 = vrot.lane.b32.xlu1 %v2314_v3, %s3515_s8 }
 0x3ad   : > { %v3119_v63 = vpop.f32.mrb[60].mxu1 }
 0x3ae   : > { %3464 = shalt.err (!%p3461_p3)
}
 0x3af   : > { %s3465_s23 = scalar_lea.hbm %s4708_s13, 8192  ;;  %s3469_s6 = scalar_lea.hbm %s4836_s5, 16384 }
 0x3b0   : > { %p3466_p4 = scmp.ne.s32.totalorder %s4708_s13, %s3465_s23  ;;  %p3470_p9 = scmp.lt.u32.totalorder %s4708_s13, %s4836_s5 }
 0x3b1   : > { %p3471_p10 = scmp.lt.u32.totalorder %s3469_s6, %s3465_s23  ;;  %p3473_p12 = scmp.lt.u32.totalorder %s3465_s23, %s4708_s13 }
 0x3b2   : > { %p3467_p7 = pnand %p3466_p4, %p3587_p5 }
 0x3b3   : > { %p3472_p11 = por %p3471_p10, %p3470_p9 }
 0x3b4   : > { %p3468_p8 = pneg %p3467_p7 }
 0x3b5   : > { %p3474_p13 = por %p3473_p12, %p3472_p11 }
 0x3b7   : > { %p3475_p0 = pnand %p3474_p13, %p3468_p8 }
 0x3b9   : > { %3478 = shalt.err (!%p3475_p0)
}
 0x3ba   : > { %s3517_s11 = smov 128   ;;  %s3518_s12 = smov 8   ;;  %v2327_v32 = vpop.f32.mrb[61].mxu1  ;;  %v3011_v18 = vpop.f32.mrb[32].mxu0 }
 0x3bb   : > { %3153 = dma.vmem_to_hbm [thread:$0]  (%p3587_p5), %s4711_s10, 8192, %s4708_s13, %s4716_s14, %s3517_s11, %s3517_s11, %s3518_s12   ;;  %v3120_v21 = vpop.f32.mrb[62].mxu1  ;;  %v1988_v57 = vpop.f32.mrb[33].mxu0 }
 0x3bc   : > { %2446 = vrot.lane.b32.xlu0 %v2327_v32, %s3515_s8  ;;  %v2330_v6 = vpop.f32.mrb[63].mxu1  ;;  %v3012_v62 = vpop.f32.mrb[34].mxu0  ;;  %s2735_s28 = sshll.u32 %s3599_s30, 8 }
 0x3bd   : > { %2448 = vrot.lane.b32.xlu1 %v2330_v6, %s3515_s8  ;;  %v1991_v17 = vpop.f32.mrb[35].mxu0  ;;  %s4748_s14 = scalar_lea.vmem %s4835_s4, %s2735_s28 }
 0x3be   : > { %v3015_v59 = vpop.f32.mrb[36].mxu0 }
 0x3bf   : > { %v2004_v53 = vpop.f32.mrb[37].mxu0 }
 0x3c0   : > { %2450 = vrot.lane.b32.xlu0 %v3119_v63, %s3515_s8  ;;  %v3016_v43 = vpop.f32.mrb[38].mxu0 }
 0x3c1   : > { %2452 = vrot.lane.b32.xlu1 %v3120_v21, %s3515_s8  ;;  %v2007_v55 = vpop.f32.mrb[39].mxu0  ;;  %v2363_v37 = vpop.permute.xlu1 %2362 }
 0x3c2   : > { %v3019_v0 = vpop.f32.mrb[40].mxu0  ;;  %v2472_v38 = vsel %vm701_vm0, %v3011_v18, %v2363_v37  ;;  %v2359_v13 = vpop.permute.xlu0 %2358 }
 0x3c3   : > { %v2020_v26 = vpop.f32.mrb[41].mxu0  ;;  %2506 = vst [vmem:[%s4748_s14 + $0x20] sm:$0xff] %v2472_v38  ;;  %v2470_v58 = vsel %vm701_vm0, %v1988_v57, %v2359_v13 }
 0x3c4   : > { %v3020_v47 = vpop.f32.mrb[42].mxu0  ;;  %2502 = vst [vmem:[%s4748_s14] sm:$0xff] %v2470_v58 }
 0x3c5   : > { %v2023_v35 = vpop.f32.mrb[43].mxu0  ;;  %v2365_v48 = vpop.permute.xlu1 %2364 }
 0x3c6   : > { %v2473_v56 = vsel %vm701_vm0, %v3012_v62, %v2365_v48 }
 0x3c7   : > { %2508 = vst [vmem:[%s4748_s14 + $0x30] sm:$0xff] %v2473_v56 }
 0x3c8   : > { %v3023_v33 = vpop.f32.mrb[44].mxu0 }
 0x3c9   : > { %v2036_v8 = vpop.f32.mrb[45].mxu0  ;;  %v2361_v46 = vpop.permute.xlu1 %2360 }
 0x3ca   : > { %v2471_v42 = vsel %vm701_vm0, %v1991_v17, %v2361_v46  ;;  %v3024_v30 = vpop.f32.mrb[46].mxu0 }
 0x3cb   : > { %2504 = vst [vmem:[%s4748_s14 + $0x10] sm:$0xff] %v2471_v42  ;;  %v2039_v28 = vpop.f32.mrb[47].mxu0 }
 0x3ce   : > { %v2371_v11 = vpop.permute.xlu0 %2370 }
 0x3cf   : > { %v2476_v10 = vsel %vm701_vm0, %v3015_v59, %v2371_v11 }
 0x3d0   : > { %2514 = vst [vmem:[%s4748_s14 + $0x60] sm:$0xff] %v2476_v10  ;;  %v2373_v31 = vpop.permute.xlu1 %2372  ;;  %v3075_v23 = vpop.f32.mrb[48].mxu0 }
 0x3d1   : > { %v2477_v29 = vsel %vm701_vm0, %v3016_v43, %v2373_v31  ;;  %v2182_v22 = vpop.f32.mrb[49].mxu0 }
 0x3d2   : > { %2516 = vst [vmem:[%s4748_s14 + $0x70] sm:$0xff] %v2477_v29  ;;  %v3076_v51 = vpop.f32.mrb[50].mxu0  ;;  %v2367_v5 = vpop.permute.xlu0 %2366 }
 0x3d3   : > { %v2474_v50 = vsel %vm701_vm0, %v2004_v53, %v2367_v5  ;;  %v2185_v12 = vpop.f32.mrb[51].mxu0 }
 0x3d4   : > { %2510 = vst [vmem:[%s4748_s14 + $0x40] sm:$0xff] %v2474_v50  ;;  %v2369_v20 = vpop.permute.xlu1 %2368 }
 0x3d5   : > { %v2475_v45 = vsel %vm701_vm0, %v2007_v55, %v2369_v20 }
 0x3d6   : > { %2512 = vst [vmem:[%s4748_s14 + $0x50] sm:$0xff] %v2475_v45 }
 0x3d8   : > { %v3079_v36 = vpop.f32.mrb[52].mxu0 }
 0x3d9   : > { %v2198_v7 = vpop.f32.mrb[53].mxu0 }
 0x3da   : > { %v3080_v52 = vpop.f32.mrb[54].mxu0 }
 0x3db   : > { %v2201_v34 = vpop.f32.mrb[55].mxu0 }
 0x3de   : > { %v2379_v41 = vpop.permute.xlu0 %2378 }
 0x3df   : > { %v2480_v61 = vsel %vm701_vm0, %v3019_v0, %v2379_v41 }
 0x3e0   : > { %2522 = vst [vmem:[%s4748_s14 + $0xa0] sm:$0xff] %v2480_v61  ;;  %v2381_v40 = vpop.permute.xlu1 %2380  ;;  %v3083_v54 = vpop.f32.mrb[56].mxu0 }
 0x3e1   : > { %v2481_v49 = vsel %vm701_vm0, %v3020_v47, %v2381_v40  ;;  %v2214_v24 = vpop.f32.mrb[57].mxu0 }
 0x3e2   : > { %2524 = vst [vmem:[%s4748_s14 + $0xb0] sm:$0xff] %v2481_v49  ;;  %v3084_v19 = vpop.f32.mrb[58].mxu0  ;;  %v2375_v4 = vpop.permute.xlu0 %2374 }
 0x3e3   : > { %v2478_v15 = vsel %vm701_vm0, %v2020_v26, %v2375_v4  ;;  %v2217_v1 = vpop.f32.mrb[59].mxu0 }
 0x3e4   : > { %2518 = vst [vmem:[%s4748_s14 + $0x80] sm:$0xff] %v2478_v15  ;;  %v2377_v27 = vpop.permute.xlu1 %2376 }
 0x3e5   : > { %v2479_v14 = vsel %vm701_vm0, %v2023_v35, %v2377_v27 }
 0x3e6   : > { %2520 = vst [vmem:[%s4748_s14 + $0x90] sm:$0xff] %v2479_v14 }
 0x3e8   : > { %v3087_v16 = vpop.f32.mrb[60].mxu0 }
 0x3e9   : > { %v2230_v9 = vpop.f32.mrb[61].mxu0 }
 0x3ea   : > { %v3088_v44 = vpop.f32.mrb[62].mxu0 }
 0x3eb   : > { %v2233_v39 = vpop.f32.mrb[63].mxu0 }
 0x3ee   : > { %v2387_v2 = vpop.permute.xlu0 %2386 }
 0x3ef   : > { %v2484_v25 = vsel %vm701_vm0, %v3023_v33, %v2387_v2 }
 0x3f0   : > { %2530 = vst [vmem:[%s4748_s14 + $0xe0] sm:$0xff] %v2484_v25  ;;  %v2389_v60 = vpop.permute.xlu1 %2388 }
 0x3f1   : > { %v2485_v3 = vsel %vm701_vm0, %v3024_v30, %v2389_v60 }
 0x3f2   : > { %2532 = vst [vmem:[%s4748_s14 + $0xf0] sm:$0xff] %v2485_v3  ;;  %v2383_v63 = vpop.permute.xlu0 %2382 }
 0x3f3   : > { %v2482_v32 = vsel %vm701_vm0, %v2036_v8, %v2383_v63 }
 0x3f4   : > { %2526 = vst [vmem:[%s4748_s14 + $0xc0] sm:$0xff] %v2482_v32  ;;  %v2385_v21 = vpop.permute.xlu1 %2384 }
 0x3f5   : > { %v2483_v18 = vsel %vm701_vm0, %v2039_v28, %v2385_v21 }
 0x3f6   : > { %2528 = vst [vmem:[%s4748_s14 + $0xd0] sm:$0xff] %v2483_v18 }
 0x400   : > { %v2427_v6 = vpop.permute.xlu0 %2426 }
 0x401   : > { %v2488_v57 = vsel %vm701_vm0, %v3075_v23, %v2427_v6 }
 0x402   : > { %2507 = vst [vmem:[%s4748_s14 + $0x28] sm:$0xff] %v2488_v57  ;;  %v2429_v62 = vpop.permute.xlu1 %2428 }
 0x403   : > { %v2489_v17 = vsel %vm701_vm0, %v3076_v51, %v2429_v62 }
 0x404   : > { %2509 = vst [vmem:[%s4748_s14 + $0x38] sm:$0xff] %v2489_v17  ;;  %v2423_v59 = vpop.permute.xlu0 %2422 }
 0x405   : > { %v2486_v53 = vsel %vm701_vm0, %v2182_v22, %v2423_v59 }
 0x406   : > { %2503 = vst [vmem:[%s4748_s14 + $0x8] sm:$0xff] %v2486_v53  ;;  %v2425_v43 = vpop.permute.xlu1 %2424 }
 0x407   : > { %v2487_v55 = vsel %vm701_vm0, %v2185_v12, %v2425_v43 }
 0x408   : > { %2505 = vst [vmem:[%s4748_s14 + $0x18] sm:$0xff] %v2487_v55 }
 0x40c   : > { %v2435_v0 = vpop.permute.xlu0 %2434 }
 0x40d   : > { %v2492_v26 = vsel %vm701_vm0, %v3079_v36, %v2435_v0 }
 0x40e   : > { %2515 = vst [vmem:[%s4748_s14 + $0x68] sm:$0xff] %v2492_v26  ;;  %v2437_v37 = vpop.permute.xlu1 %2436 }
 0x40f   : > { %v2493_v38 = vsel %vm701_vm0, %v3080_v52, %v2437_v37 }
 0x410   : > { %2517 = vst [vmem:[%s4748_s14 + $0x78] sm:$0xff] %v2493_v38  ;;  %v2431_v47 = vpop.permute.xlu0 %2430 }
 0x411   : > { %v2490_v13 = vsel %vm701_vm0, %v2198_v7, %v2431_v47 }
 0x412   : > { %2511 = vst [vmem:[%s4748_s14 + $0x48] sm:$0xff] %v2490_v13  ;;  %v2433_v35 = vpop.permute.xlu1 %2432 }
 0x413   : > { %v2491_v58 = vsel %vm701_vm0, %v2201_v34, %v2433_v35 }
 0x414   : > { %2513 = vst [vmem:[%s4748_s14 + $0x58] sm:$0xff] %v2491_v58 }
 0x418   : > { %v2443_v48 = vpop.permute.xlu0 %2442 }
 0x419   : > { %v2496_v56 = vsel %vm701_vm0, %v3083_v54, %v2443_v48 }
 0x41a   : > { %2523 = vst [vmem:[%s4748_s14 + $0xa8] sm:$0xff] %v2496_v56  ;;  %v2445_v33 = vpop.permute.xlu1 %2444 }
 0x41b   : > { %v2497_v8 = vsel %vm701_vm0, %v3084_v19, %v2445_v33 }
 0x41c   : > { %2525 = vst [vmem:[%s4748_s14 + $0xb8] sm:$0xff] %v2497_v8  ;;  %v2439_v46 = vpop.permute.xlu0 %2438 }
 0x41d   : > { %v2494_v42 = vsel %vm701_vm0, %v2214_v24, %v2439_v46 }
 0x41e   : > { %2519 = vst [vmem:[%s4748_s14 + $0x88] sm:$0xff] %v2494_v42  ;;  %v2441_v30 = vpop.permute.xlu1 %2440 }
 0x41f   : > { %v2495_v28 = vsel %vm701_vm0, %v2217_v1, %v2441_v30 }
 0x420   : > { %2521 = vst [vmem:[%s4748_s14 + $0x98] sm:$0xff] %v2495_v28 }
 0x42e   : > { %v2447_v11 = vpop.permute.xlu0 %2446 }
 0x42f   : > { %v2498_v10 = vsel %vm701_vm0, %v2230_v9, %v2447_v11  ;;  %v2449_v31 = vpop.permute.xlu1 %2448 }
 0x430   : > { %2527 = vst [vmem:[%s4748_s14 + $0xc8] sm:$0xff] %v2498_v10  ;;  %v2499_v23 = vsel %vm701_vm0, %v2233_v39, %v2449_v31 }
 0x431   : > { %2529 = vst [vmem:[%s4748_s14 + $0xd8] sm:$0xff] %v2499_v23 }
 0x432   : > { %v2451_v29 = vpop.permute.xlu0 %2450 }
 0x433   : > { %v2500_v22 = vsel %vm701_vm0, %v3087_v16, %v2451_v29  ;;  %v2453_v51 = vpop.permute.xlu1 %2452 }
 0x434   : > { %2531 = vst [vmem:[%s4748_s14 + $0xe8] sm:$0xff] %v2500_v22  ;;  %v2501_v5 = vsel %vm701_vm0, %v3088_v44, %v2453_v51 }
 0x435   : > { %2533 = vst [vmem:[%s4748_s14 + $0xf8] sm:$0xff] %v2501_v5 }
 0x436 PF: > { %p3159_p5 = scmp.ge.s32.totalorder %s3513_s21, 2  ;;  %s2579_s30 = sand.u32 1, %s3501_s18  }
 0x437   : > { %s2580_s8 = scalar_lea.sflag [#allocation3], %s2579_s30 }
 0x438   : > { %p3156_p1 = pnand %p3159_p5, %p3591_p6 }
 0x43a   : > { %3496 = dma.done.wait (!%p3156_p1), %s2580_s8, 8192  }
 0x43b   : > { %3498 = vsyncadd (!%p3156_p1), %s2580_s8, 4294959104  ;;  %p16_p2 = scmp.ge.s32.totalorder %s3574_s24, 4   ;;  %s4935_s18 = smov %s3505_s19 }
 0x43c   : > { %s4936_s19 = smov %s3509_s20  ;;  %s4937_s20 = smov %s3585_s27 }
 0x43d   : > { %s4938_s21 = smov %s3574_s24  ;;  %18 = sbr.rel (!%p16_p2) target bundleno = 3 (0x3), region = 92 }
 0x444   :  { %2585 = vsyncpa [#allocation3], 1 }
 0x445   :  { %2587 = vsyncpa [#allocation3 + $0x1], 1 }

</bundles_post_ra>
